<compile_context>
chip_gen: v6e
topology: v6e:2x2x1
jax: 0.10.0
libtpu: 0.0.40
codegen_flags: <defaults>
</compile_context>

<pallas_src>
import functools

import jax
import jax.numpy as jnp
import numpy as np
from jax.experimental import pallas as pl
from jax.experimental.pallas import tpu as pltpu


def _round_up(n, m):
    return ((n + m - 1) // m) * m


def _vmem_budget_bytes():
    """Physical per-core VMEM minus headroom for Mosaic internal scratch."""
    try:
        cap = int(pltpu.get_tpu_info().vmem_capacity_bytes)
    except Exception:  # non-TPU backend / older jax: conservative default
        cap = 64 << 20
    return max(cap - (16 << 20), 32 << 20)


# ---------------------------------------------------------------------------
# Kernel 1: streaming global average pool over S = T*H*W.
#   x block: (bm, F, ts), F on sublanes, ts on lanes; reduce over lanes (XLU)
#   into an f32 VMEM accumulator; finalize (divide by true S) on the last tile.
# ---------------------------------------------------------------------------
def _pool_kernel(x_ref, feats_ref, acc_ref, *, inv_s, s_total, ts, mask_last):
    s = pl.program_id(1)
    ns = pl.num_programs(1)

    @pl.when(s == 0)
    def _():
        acc_ref[...] = jnp.zeros_like(acc_ref)

    if not mask_last:
        acc_ref[...] += jnp.sum(x_ref[...].astype(jnp.float32), axis=-1)
    else:
        @pl.when(s != ns - 1)
        def _():
            acc_ref[...] += jnp.sum(x_ref[...].astype(jnp.float32), axis=-1)

        @pl.when(s == ns - 1)
        def _():
            # Ragged last S tile: zero out lanes past the true S before summing.
            col = jax.lax.broadcasted_iota(jnp.int32, x_ref.shape, 2)
            valid = (s * ts + col) < s_total
            xb = jnp.where(valid, x_ref[...].astype(jnp.float32), 0.0)
            acc_ref[...] += jnp.sum(xb, axis=-1)

    @pl.when(s == ns - 1)
    def _():
        feats_ref[...] = acc_ref[...] * jnp.float32(inv_s)


# ---------------------------------------------------------------------------
# Kernel 2: classifier head on pooled features (tiny, single program).
#   L2-norm (per row) / training-mode BatchNorm1d (full-batch stats, gamma=1,
#   beta=0) / Linear(num_ftrs, num_classes) with bias.
# ---------------------------------------------------------------------------
def _head_kernel(feats_ref, w_ref, b_ref, o_ref, *, use_l2_norm, use_bn, bn_eps):
    feats = feats_ref[...]                                        # (B, F) f32
    if use_l2_norm:
        # F.normalize(x, p=2, dim=1), eps=1e-12 — single EUP rsqrt, no divide.
        sumsq = jnp.sum(feats * feats, axis=1, keepdims=True)
        feats = feats * jax.lax.rsqrt(jnp.maximum(sumsq, 1e-24))
    if use_bn:
        # nn.BatchNorm1d in training mode: batch statistics over the full B.
        mu = jnp.mean(feats, axis=0, keepdims=True)
        var = jnp.mean((feats - mu) * (feats - mu), axis=0, keepdims=True)
        feats = (feats - mu) * jax.lax.rsqrt(var + bn_eps)
    # TODO(synk): use_dropout (training-mode random masking) omitted;
    # eval-mode dropout is the identity.
    logits = jnp.dot(feats.astype(w_ref.dtype), w_ref[...],
                     preferred_element_type=jnp.float32)
    o_ref[...] = logits + b_ref[...]


def finetune_forward(x, w_t, bias, *, use_l2_norm=False, use_bn=False,
                     bn_eps=1e-5, bm=None, ts_max=None, head_dtype=None):
    """Forward pass of Finetune_Model.

    x:    (B, F, T, H, W) channels-first video features.  Streamed in its own
          dtype (bf16 input halves HBM traffic of the dominant pooling stream;
          accumulation is f32 in-kernel either way).
    w_t:  (F, C) classifier weight (transpose of torch's (C, F) Linear weight).
    bias: (1, C) or (C,) classifier bias.
    Returns (B, C) float32 logits.
    """
    B, F, T, H, W = x.shape
    C = w_t.shape[-1]
    S = T * H * W

    # Free (metadata-only) flatten of the contiguous trailing dims; no extra
    # HBM pass over x.
    x_bfs = x.reshape(B, F, S)
    bias = bias.reshape(1, -1)

    # ---- batch tiling ------------------------------------------------------
    # Output feats block is (bm, F): bm must be a multiple of 8 or equal B.
    # BN no longer constrains bm because the BN epilogue runs in the separate
    # full-batch head kernel, so the "parallel" axis can have >= 2 programs.
    if bm is None or bm <= 0 or (B % bm) != 0 or (bm != B and bm % 8 != 0):
        if B % 16 == 0:
            bm = B // 2
        elif B % 8 == 0 and B > 8:
            bm = 8
        else:
            bm = B
    nb = B // bm

    # ---- VMEM-budget-derived S tile ---------------------------------------
    budget = _vmem_budget_bytes()
    itemsize = jnp.dtype(x_bfs.dtype).itemsize
    misc = 3 * bm * F * 4 + (2 << 20)        # feats out (x2) + acc scratch + slack
    ts_fit = (budget - misc) // (2 * bm * F * itemsize)   # double-buffered x tile
    ts_fit = max(128, (ts_fit // 128) * 128)
    if ts_max is not None:
        ts_fit = max(128, min(ts_fit, (max(int(ts_max), 128) // 128) * 128))
    if S <= ts_fit:
        ts, ns, mask_last = S, 1, False      # whole S in one tile (full-dim block)
    else:
        ts = ts_fit                          # multiple of 128 on the lane axis
        ns = pl.cdiv(S, ts)
        mask_last = (S % ts) != 0

    pool = pl.pallas_call(
        functools.partial(_pool_kernel, inv_s=1.0 / float(S), s_total=S,
                          ts=ts, mask_last=mask_last),
        out_shape=jax.ShapeDtypeStruct((B, F), jnp.float32),
        grid_spec=pltpu.PrefetchScalarGridSpec(
            num_scalar_prefetch=0,
            grid=(nb, ns),
            in_specs=[pl.BlockSpec((bm, F, ts), lambda b, s: (b, 0, s))],
            out_specs=pl.BlockSpec((bm, F), lambda b, s: (b, 0)),
            scratch_shapes=[pltpu.VMEM((bm, F), jnp.float32)],
        ),
        compiler_params=pltpu.CompilerParams(
            dimension_semantics=("parallel", "arbitrary"),
            vmem_limit_bytes=int(budget),
        ),
        cost_estimate=pl.CostEstimate(
            flops=B * F * S,
            transcendentals=0,
            bytes_accessed=int(x_bfs.size * itemsize + B * F * 4),
        ),
    )
    feats = pool(x_bfs)                                           # (B, F) f32

    # ---- tiny head kernel on the pooled features ---------------------------
    if head_dtype is None:
        head_dtype = w_t.dtype
    head_dtype = jnp.dtype(head_dtype)
    Cp = _round_up(C, 128)                   # lane-dense, unmasked output stores
    w_p = jnp.pad(w_t, ((0, 0), (0, Cp - C))).astype(head_dtype)
    b_p = jnp.pad(bias.astype(jnp.float32), ((0, 0), (0, Cp - C)))

    head = pl.pallas_call(
        functools.partial(_head_kernel, use_l2_norm=use_l2_norm,
                          use_bn=use_bn, bn_eps=float(bn_eps)),
        out_shape=jax.ShapeDtypeStruct((B, Cp), jnp.float32),
        compiler_params=pltpu.CompilerParams(vmem_limit_bytes=int(budget)),
        cost_estimate=pl.CostEstimate(
            flops=2 * B * F * Cp,
            transcendentals=0,
            bytes_accessed=int(B * F * 4 + F * Cp * head_dtype.itemsize
                               + B * Cp * 4),
        ),
    )
    logits_p = head(feats, w_p, b_p)
    return logits_p[:, :C]


def orthogonal_init(key, rows, cols):
    """Mimics nn.init.orthogonal_(param, gain=1) (deterministic JAX RNG)."""
    n, m = max(rows, cols), min(rows, cols)
    a = jax.random.normal(key, (n, m), jnp.float32)
    q, r = jnp.linalg.qr(a)
    q = q * jnp.sign(jnp.diagonal(r))        # make the decomposition unique
    if rows < cols:
        q = q.T
    return q[:rows, :cols]


def reference_forward(x, w_t, bias, *, use_l2_norm=False, use_bn=False,
                      bn_eps=1e-5):
    B, F = x.shape[:2]
    feats = jnp.mean(x.reshape(B, F, -1).astype(jnp.float32), axis=-1)
    if use_l2_norm:
        nrm = jnp.sqrt(jnp.sum(feats * feats, axis=1, keepdims=True))
        feats = feats / jnp.maximum(nrm, 1e-12)
    if use_bn:
        mu = jnp.mean(feats, axis=0, keepdims=True)
        var = jnp.mean((feats - mu) ** 2, axis=0, keepdims=True)
        feats = (feats - mu) / jnp.sqrt(var + bn_eps)
    logits = jnp.dot(feats, w_t.astype(jnp.float32),
                     precision=jax.lax.Precision.HIGHEST)
    return logits + bias.reshape(1, -1)


if __name__ == "__main__":
    # Small, module-consistent shapes: batch=16 clips, num_ftrs=128 feature
    # channels, 2x10x10 spatio-temporal grid (S=200, ragged vs. a 128-wide
    # S tile), 101 classes (UCF101 head).
    B, NUM_FTRS, T, H, W = 16, 128, 2, 10, 10
    NUM_CLASSES = 101

    key = jax.random.PRNGKey(0)
    kx, kw = jax.random.split(key)
    x = jax.random.normal(kx, (B, NUM_FTRS, T, H, W), jnp.float32)

    # classifier: Linear(num_ftrs, num_classes); weight (C, F) orthogonal, bias 0.
    w = orthogonal_init(kw, NUM_CLASSES, NUM_FTRS)   # torch (C, F) layout
    w_t = jnp.asarray(w).T                           # (F, C) for feats @ W
    bias = jnp.zeros((1, NUM_CLASSES), jnp.float32)

    # Config 1: '--use_l2_norm' head.  ts_max=128 forces a multi-step S grid
    # (2 tiles with a ragged last tile -> in-kernel mask path) and bm=B/2=8
    # gives 2 programs on the "parallel" batch axis.
    out1 = jax.block_until_ready(
        finetune_forward(x, w_t, bias, use_l2_norm=True, ts_max=128))
    ref1 = reference_forward(x, w_t, bias, use_l2_norm=True)
    np.testing.assert_allclose(np.asarray(out1), np.asarray(ref1),
                               rtol=1e-4, atol=1e-4)
    assert out1.shape == (B, NUM_CLASSES)

    # Config 2: final-BN head (training-mode batch statistics, computed in the
    # separate full-batch head kernel); default tiling puts all of S in one
    # full-dim tile.
    out2 = jax.block_until_ready(finetune_forward(x, w_t, bias, use_bn=True))
    ref2 = reference_forward(x, w_t, bias, use_bn=True)
    np.testing.assert_allclose(np.asarray(out2), np.asarray(ref2),
                               rtol=1e-4, atol=1e-4)
    assert out2.shape == (B, NUM_CLASSES)

    # Config 3: bf16 streaming of x (halves the HBM-bound pooling stream) and
    # bf16 classifier weight on the MXU; accumulation stays f32 in-kernel.
    # Reference is computed from the same bf16 values, so only bf16-dot error
    # remains -> looser tolerance.
    x_bf16 = x.astype(jnp.bfloat16)
    out3 = jax.block_until_ready(
        finetune_forward(x_bf16, w_t, bias, use_l2_norm=True, ts_max=128,
                         head_dtype=jnp.bfloat16))
    ref3 = reference_forward(x_bf16.astype(jnp.float32), w_t, bias,
                             use_l2_norm=True)
    np.testing.assert_allclose(np.asarray(out3), np.asarray(ref3),
                               rtol=2e-2, atol=2e-2)
    assert out3.shape == (B, NUM_CLASSES)

    print("KERNEL_OK")
</pallas_src>

<mosaic_0001>
module attributes {stable_mosaic.version = 11 : i64} {
  func.func @_pool_kernel(%arg0: i32, %arg1: i32, %arg2: memref<8x128x128xf32, #tpu.memory_space<vmem>>, %arg3: memref<8x128xf32, #tpu.memory_space<vmem>>, %arg4: memref<8x128xf32, #tpu.memory_space<vmem>>) attributes {dimension_semantics = [#tpu.dimension_semantics<parallel>, #tpu.dimension_semantics<arbitrary>], iteration_bounds = array<i64: 2, 2>, scalar_prefetch = 0 : i64, scratch_operands = 1 : i64, tpu.core_type = #tpu.core_type<tc>, window_params = [{transform_indices = @transform_0, window_bounds = array<i64: 8, 128, 128>}, {transform_indices = @transform_1, window_bounds = array<i64: 8, 128>}]} {
    %c0_i32 = arith.constant 0 : i32
    %0 = arith.cmpi eq, %arg1, %c0_i32 : i32
    %1 = arith.extui %0 : i1 to i32
    %c0_i32_0 = arith.constant 0 : i32
    %2 = arith.cmpi ne, %1, %c0_i32_0 : i32
    scf.if %2 {
      %cst = arith.constant 0.000000e+00 : f32
      %12 = vector.broadcast %cst : f32 to vector<8x128xf32>
      %c0 = arith.constant 0 : index
      %c0_6 = arith.constant 0 : index
      %13 = vector.load %arg4[%c0, %c0_6] : memref<8x128xf32, #tpu.memory_space<vmem>>, vector<8x128xf32>
      tpu.vector_store %arg4[%c0, %c0_6], %12 {strides = array<i32>} : memref<8x128xf32, #tpu.memory_space<vmem>>, vector<8x128xf32>,
    } else {
    }
    %c1_i32 = arith.constant 1 : i32
    %3 = arith.cmpi ne, %arg1, %c1_i32 : i32
    %4 = arith.extui %3 : i1 to i32
    %c0_i32_1 = arith.constant 0 : i32
    %5 = arith.cmpi ne, %4, %c0_i32_1 : i32
    scf.if %5 {
      %c0 = arith.constant 0 : index
      %c0_6 = arith.constant 0 : index
      %12 = vector.load %arg4[%c0, %c0_6] : memref<8x128xf32, #tpu.memory_space<vmem>>, vector<8x128xf32>
      %c0_7 = arith.constant 0 : index
      %c0_8 = arith.constant 0 : index
      %c0_9 = arith.constant 0 : index
      %13 = vector.load %arg2[%c0_7, %c0_8, %c0_9] : memref<8x128x128xf32, #tpu.memory_space<vmem>>, vector<8x128x128xf32>
      %cst = arith.constant dense<0.000000e+00> : vector<8x128xf32>
      %14 = vector.multi_reduction <add>, %13, %cst [2] : vector<8x128x128xf32> to vector<8x128xf32>
      %15 = arith.addf %12, %14 : vector<8x128xf32>
      %c0_10 = arith.constant 0 : index
      %c0_11 = arith.constant 0 : index
      %16 = vector.load %arg4[%c0_10, %c0_11] : memref<8x128xf32, #tpu.memory_space<vmem>>, vector<8x128xf32>
      tpu.vector_store %arg4[%c0_10, %c0_11], %15 {strides = array<i32>} : memref<8x128xf32, #tpu.memory_space<vmem>>, vector<8x128xf32>,
    } else {
    }
    %c1_i32_2 = arith.constant 1 : i32
    %6 = arith.cmpi eq, %arg1, %c1_i32_2 : i32
    %7 = arith.extui %6 : i1 to i32
    %c0_i32_3 = arith.constant 0 : i32
    %8 = arith.cmpi ne, %7, %c0_i32_3 : i32
    scf.if %8 {
      %12 = tpu.iota {dimensions = array<i32: 2>} : vector<8x128x128xi32>
      %c128_i32 = arith.constant 128 : i32
      %13 = arith.muli %arg1, %c128_i32 : i32
      %14 = vector.broadcast %13 : i32 to vector<8x128x128xi32>
      %15 = arith.addi %14, %12 : vector<8x128x128xi32>
      %c200_i32 = arith.constant 200 : i32
      %16 = vector.broadcast %c200_i32 : i32 to vector<8x128x128xi32>
      %17 = arith.cmpi slt, %15, %16 : vector<8x128x128xi32>
      %c0 = arith.constant 0 : index
      %c0_6 = arith.constant 0 : index
      %c0_7 = arith.constant 0 : index
      %18 = vector.load %arg2[%c0, %c0_6, %c0_7] : memref<8x128x128xf32, #tpu.memory_space<vmem>>, vector<8x128x128xf32>
      %cst = arith.constant 0.000000e+00 : f32
      %19 = vector.broadcast %cst : f32 to vector<8x128x128xf32>
      %20 = arith.select %17, %18, %19 : vector<8x128x128xi1>, vector<8x128x128xf32>
      %c0_8 = arith.constant 0 : index
      %c0_9 = arith.constant 0 : index
      %21 = vector.load %arg4[%c0_8, %c0_9] : memref<8x128xf32, #tpu.memory_space<vmem>>, vector<8x128xf32>
      %cst_10 = arith.constant dense<0.000000e+00> : vector<8x128xf32>
      %22 = vector.multi_reduction <add>, %20, %cst_10 [2] : vector<8x128x128xf32> to vector<8x128xf32>
      %23 = arith.addf %21, %22 : vector<8x128xf32>
      %c0_11 = arith.constant 0 : index
      %c0_12 = arith.constant 0 : index
      %24 = vector.load %arg4[%c0_11, %c0_12] : memref<8x128xf32, #tpu.memory_space<vmem>>, vector<8x128xf32>
      tpu.vector_store %arg4[%c0_11, %c0_12], %23 {strides = array<i32>} : memref<8x128xf32, #tpu.memory_space<vmem>>, vector<8x128xf32>,
    } else {
    }
    %c1_i32_4 = arith.constant 1 : i32
    %9 = arith.cmpi eq, %arg1, %c1_i32_4 : i32
    %10 = arith.extui %9 : i1 to i32
    %c0_i32_5 = arith.constant 0 : i32
    %11 = arith.cmpi ne, %10, %c0_i32_5 : i32
    scf.if %11 {
      %c0 = arith.constant 0 : index
      %c0_6 = arith.constant 0 : index
      %12 = vector.load %arg4[%c0, %c0_6] : memref<8x128xf32, #tpu.memory_space<vmem>>, vector<8x128xf32>
      %cst = arith.constant 5.000000e-03 : f32
      %13 = vector.broadcast %cst : f32 to vector<8x128xf32>
      %14 = arith.mulf %12, %13 : vector<8x128xf32>
      %c0_7 = arith.constant 0 : index
      %c0_8 = arith.constant 0 : index
      %15 = vector.load %arg3[%c0_7, %c0_8] : memref<8x128xf32, #tpu.memory_space<vmem>>, vector<8x128xf32>
      tpu.vector_store %arg3[%c0_7, %c0_8], %14 {strides = array<i32>} : memref<8x128xf32, #tpu.memory_space<vmem>>, vector<8x128xf32>,
    } else {
    }
    return
  }
  func.func @transform_0(%arg0: i32, %arg1: i32) -> (i32, i32, i32) {
    %c0_i32 = arith.constant 0 : i32
    %c0_i32_0 = arith.constant 0 : i32
    return %arg0, %c0_i32, %arg1 : i32, i32, i32
  }
  func.func @transform_1(%arg0: i32, %arg1: i32) -> (i32, i32) {
    %c0_i32 = arith.constant 0 : i32
    %c0_i32_0 = arith.constant 0 : i32
    return %arg0, %c0_i32 : i32, i32
  }
}

</mosaic_0001>

<bundles_post_ra>
// kernel: tpu_custom_call.1
= control target key start
LH: loop header
LB: loop body
LE: loop exit
PB: predicated region body
PF: predicated region fallthrough
CT: control target
= control target key end

     0   :  { %6 = vsyncpa [#allocation5], 0  ;;  %s5156_s0 = inlined_call_operand.vmem [shape: f32[16,128,200], index: 0, kind: input, shape index: {}]   ;;  %s5157_s1 = inlined_call_operand.hbm [shape: f32[16,128], index: 1, kind: output, shape index: {}]  }
   0x1   :  { %8 = vsyncpa [#allocation5 + $0x1], 0  ;;  %s3534_s6 = smov 0   ;;  %s3536_s7 = smov 0  }
   0x2   :  { %s3538_s8 = smov 0   ;;  %s3540_s9 = smov 0  }
   0x3   :  { %s3542_s10 = smov 0   ;;  %s3544_s11 = smov 0  }
   0x4   :  { %s3546_s12 = smov 0   ;;  %s3548_s13 = smov 0  }
   0x5   :  { %s3550_s14 = smov 0   ;;  %s3552_s15 = smov 0  }
   0x6 LB: > { %s3304_s16 = sadd.s32 4294967295, %s3520_s15   ;;  %s3305_s17 = sadd.s32 4294967294, %s3520_s15   ;;  %s3520_s15 = sphi %s3552_s15, %s14_s15   ;;  %s3516_s14 = sphi %s3550_s14, %s5175_s14   ;;  %s3512_s13 = sphi %s3548_s13, %s5174_s13   ;;  %s3508_s12 = sphi %s3546_s12, %s5173_s12   ;;  %s3504_s11 = sphi %s3544_s11, %s5172_s11   ;;  %s3500_s10 = sphi %s3542_s10, %s5171_s10   ;;  %s3496_s9 = sphi %s3540_s9, %s5170_s9   ;;  %s3492_s8 = sphi %s3538_s8, %s5169_s8   ;;  %s3488_s7 = sphi %s3536_s7, %s5168_s7   ;;  %s3484_s6 = sphi %s3534_s6, %s5167_s6  }
   0x7   : > { %s23_s18 = sadd.s32 1, %s3512_s13  ;;  %s26_s19 = sadd.s32 1, %s3516_s14 }
   0x8   : > { %p24_p0 = scmp.ge.s32.totalorder %s23_s18, 2  ;;  %s35_s20 = sadd.s32 1, %s3500_s10 }
   0x9   : > { %p42_p1 = scmp.ne.s32.totalorder %s3500_s10, %s3496_s9  ;;  %p43_p2 = scmp.eq.s32.totalorder %s3520_s15, 0 }
   0xa   : > { %s5177_s18 = smov (%p24_p0, %s23_s18), 0  ;;  %s5179_s19 = smov (!%p24_p0, %s26_s19), %s3516_s14 }
   0xb   : > { %s31_s21 = ssub.s32 %s3512_s13, %s5177_s18  ;;  %p3597_p3 = por %p43_p2, %p42_p1 }
   0xc   : > { %p28_p4 = scmp.ge.s32.totalorder %s5179_s19, 2  ;;  %s61_s23 = sadd.s32 1, %s3492_s8 }
   0xd   : > { %p71_p5 = scmp.ne.s32.totalorder %s3492_s8, %s3488_s7  ;;  %p72_p6 = scmp.eq.s32.totalorder %s3304_s16, 3 }
   0xe   : > { %s5181_s19 = smov (%p28_p4, %s5179_s19), 0  ;;  %p77_p8 = scmp.ne.s32.totalorder %s3488_s7, %s3484_s6 }
   0xf   : > { %p3606_p7 = por %p72_p6, %p71_p5  ;;  %s30_s25 = ssub.s32 %s3516_s14, %s5181_s19 }
  0x10   : > { %p78_p9 = scmp.eq.s32.totalorder %s3305_s17, 3  ;;  %s32_s26 = sor.u32 %s31_s21, %s30_s25 }
  0x11   : > { %p59_p10 = scmp.eq.s32.totalorder %s30_s25, 0  ;;  %p33_p11 = scmp.eq.s32.totalorder %s32_s26, 0 }
  0x12   : > { %p3614_p12 = por %p78_p9, %p77_p8  ;;  %p3307_p13 = scmp.ge.s32.totalorder %s3520_s15, 4 }
  0x13   : > { %s3619_s28 = scalar_select %p59_p10, %s3492_s8, %s61_s23  }
  0x14   : > { %s3622_s29 = scalar_select %p33_p11, %s3500_s10, %s35_s20  }
  0x15   : > { %94 = sbr.rel (%p3307_p13) target bundleno = 96 (0x60), region = 16 }
  0x1a   : > { %97 = sbr.rel (!%p3597_p3) target bundleno = 96 (0x60), region = 20  ;;  %s99_s30 = sand.u32 (%p3597_p3), 1, %s3500_s10  }
  0x1b   : > { %s3323_s2 = sshll.u32 (%p3597_p3), %s3516_s14, 8  ;;  %s3308_s3 = sshll.u32 (%p3597_p3), %s99_s30, 10 }
  0x1c   : > { %s104_s4 = sadd.s32 (%p3597_p3), %s3512_s13, %s3323_s2  ;;  %s3638_s20 = scalar_lea.vmem (%p3597_p3), [#allocation3], %s3308_s3 }
  0x1d   : > { %s3311_s5 = sshll.u32 (%p3597_p3), %s104_s4, 3 }
  0x1e   : > { %s3633_s21 = scalar_lea.vmem (%p3597_p3), %s5156_s0, %s3311_s5 }
  0x1f   : > { %v389_v0 = vld [vmem:[%s3633_s21] sm:$0xff]  ;;  %v391_v1 = vld [vmem:[%s3633_s21 + $0x10] sm:$0xff] }
  0x20   : > { %v393_v2 = vld [vmem:[%s3633_s21 + $0x20] sm:$0xff]  ;;  %390 = vst [vmem:[%s3638_s20] sm:$0xff] %v389_v0  ;;  %392 = vst [vmem:[%s3638_s20 + $0x8] sm:$0xff] %v391_v1  ;;  %v395_v3 = vld [vmem:[%s3633_s21 + $0x30] sm:$0xff] }
  0x21   : > { %394 = vst [vmem:[%s3638_s20 + $0x10] sm:$0xff] %v393_v2  ;;  %v397_v4 = vld [vmem:[%s3633_s21 + $0x40] sm:$0xff]  ;;  %v399_v5 = vld [vmem:[%s3633_s21 + $0x50] sm:$0xff]  ;;  %396 = vst [vmem:[%s3638_s20 + $0x18] sm:$0xff] %v395_v3 }
  0x22   : > { %398 = vst [vmem:[%s3638_s20 + $0x20] sm:$0xff] %v397_v4  ;;  %400 = vst [vmem:[%s3638_s20 + $0x28] sm:$0xff] %v399_v5  ;;  %v401_v6 = vld [vmem:[%s3633_s21 + $0x60] sm:$0xff]  ;;  %v403_v7 = vld [vmem:[%s3633_s21 + $0x70] sm:$0xff] }
  0x23   : > { %v405_v8 = vld [vmem:[%s3633_s21 + $0x80] sm:$0xff]  ;;  %402 = vst [vmem:[%s3638_s20 + $0x30] sm:$0xff] %v401_v6  ;;  %404 = vst [vmem:[%s3638_s20 + $0x38] sm:$0xff] %v403_v7  ;;  %v407_v9 = vld [vmem:[%s3633_s21 + $0x90] sm:$0xff] }
  0x24   : > { %406 = vst [vmem:[%s3638_s20 + $0x40] sm:$0xff] %v405_v8  ;;  %v409_v10 = vld [vmem:[%s3633_s21 + $0xa0] sm:$0xff]  ;;  %v411_v11 = vld [vmem:[%s3633_s21 + $0xb0] sm:$0xff]  ;;  %408 = vst [vmem:[%s3638_s20 + $0x48] sm:$0xff] %v407_v9 }
  0x25   : > { %410 = vst [vmem:[%s3638_s20 + $0x50] sm:$0xff] %v409_v10  ;;  %412 = vst [vmem:[%s3638_s20 + $0x58] sm:$0xff] %v411_v11  ;;  %v413_v12 = vld [vmem:[%s3633_s21 + $0xc0] sm:$0xff]  ;;  %v415_v13 = vld [vmem:[%s3633_s21 + $0xd0] sm:$0xff] }
  0x26   : > { %v417_v14 = vld [vmem:[%s3633_s21 + $0xe0] sm:$0xff]  ;;  %414 = vst [vmem:[%s3638_s20 + $0x60] sm:$0xff] %v413_v12  ;;  %416 = vst [vmem:[%s3638_s20 + $0x68] sm:$0xff] %v415_v13  ;;  %v419_v15 = vld [vmem:[%s3633_s21 + $0xf0] sm:$0xff] }
  0x27   : > { %418 = vst [vmem:[%s3638_s20 + $0x70] sm:$0xff] %v417_v14  ;;  %v421_v16 = vld [vmem:[%s3633_s21 + $0x100] sm:$0xff]  ;;  %v423_v17 = vld [vmem:[%s3633_s21 + $0x110] sm:$0xff]  ;;  %420 = vst [vmem:[%s3638_s20 + $0x78] sm:$0xff] %v419_v15 }
  0x28   : > { %422 = vst [vmem:[%s3638_s20 + $0x80] sm:$0xff] %v421_v16  ;;  %424 = vst [vmem:[%s3638_s20 + $0x88] sm:$0xff] %v423_v17  ;;  %v425_v18 = vld [vmem:[%s3633_s21 + $0x120] sm:$0xff]  ;;  %v427_v19 = vld [vmem:[%s3633_s21 + $0x130] sm:$0xff] }
  0x29   : > { %v429_v20 = vld [vmem:[%s3633_s21 + $0x140] sm:$0xff]  ;;  %426 = vst [vmem:[%s3638_s20 + $0x90] sm:$0xff] %v425_v18  ;;  %428 = vst [vmem:[%s3638_s20 + $0x98] sm:$0xff] %v427_v19  ;;  %v431_v21 = vld [vmem:[%s3633_s21 + $0x150] sm:$0xff] }
  0x2a   : > { %430 = vst [vmem:[%s3638_s20 + $0xa0] sm:$0xff] %v429_v20  ;;  %v433_v22 = vld [vmem:[%s3633_s21 + $0x160] sm:$0xff]  ;;  %v435_v23 = vld [vmem:[%s3633_s21 + $0x170] sm:$0xff]  ;;  %432 = vst [vmem:[%s3638_s20 + $0xa8] sm:$0xff] %v431_v21 }
  0x2b   : > { %434 = vst [vmem:[%s3638_s20 + $0xb0] sm:$0xff] %v433_v22  ;;  %436 = vst [vmem:[%s3638_s20 + $0xb8] sm:$0xff] %v435_v23  ;;  %v437_v24 = vld [vmem:[%s3633_s21 + $0x180] sm:$0xff]  ;;  %v439_v25 = vld [vmem:[%s3633_s21 + $0x190] sm:$0xff] }
  0x2c   : > { %v441_v26 = vld [vmem:[%s3633_s21 + $0x1a0] sm:$0xff]  ;;  %438 = vst [vmem:[%s3638_s20 + $0xc0] sm:$0xff] %v437_v24  ;;  %440 = vst [vmem:[%s3638_s20 + $0xc8] sm:$0xff] %v439_v25  ;;  %v443_v27 = vld [vmem:[%s3633_s21 + $0x1b0] sm:$0xff] }
  0x2d   : > { %442 = vst [vmem:[%s3638_s20 + $0xd0] sm:$0xff] %v441_v26  ;;  %v445_v28 = vld [vmem:[%s3633_s21 + $0x1c0] sm:$0xff]  ;;  %v447_v29 = vld [vmem:[%s3633_s21 + $0x1d0] sm:$0xff]  ;;  %444 = vst [vmem:[%s3638_s20 + $0xd8] sm:$0xff] %v443_v27 }
  0x2e   : > { %446 = vst [vmem:[%s3638_s20 + $0xe0] sm:$0xff] %v445_v28  ;;  %448 = vst [vmem:[%s3638_s20 + $0xe8] sm:$0xff] %v447_v29  ;;  %v449_v30 = vld [vmem:[%s3633_s21 + $0x1e0] sm:$0xff]  ;;  %v451_v31 = vld [vmem:[%s3633_s21 + $0x1f0] sm:$0xff] }
  0x2f   : > { %v453_v32 = vld [vmem:[%s3633_s21 + $0x200] sm:$0xff]  ;;  %450 = vst [vmem:[%s3638_s20 + $0xf0] sm:$0xff] %v449_v30  ;;  %452 = vst [vmem:[%s3638_s20 + $0xf8] sm:$0xff] %v451_v31  ;;  %v455_v33 = vld [vmem:[%s3633_s21 + $0x210] sm:$0xff] }
  0x30   : > { %454 = vst [vmem:[%s3638_s20 + $0x100] sm:$0xff] %v453_v32  ;;  %v457_v34 = vld [vmem:[%s3633_s21 + $0x220] sm:$0xff]  ;;  %v459_v35 = vld [vmem:[%s3633_s21 + $0x230] sm:$0xff]  ;;  %456 = vst [vmem:[%s3638_s20 + $0x108] sm:$0xff] %v455_v33 }
  0x31   : > { %458 = vst [vmem:[%s3638_s20 + $0x110] sm:$0xff] %v457_v34  ;;  %460 = vst [vmem:[%s3638_s20 + $0x118] sm:$0xff] %v459_v35  ;;  %v461_v36 = vld [vmem:[%s3633_s21 + $0x240] sm:$0xff]  ;;  %v463_v37 = vld [vmem:[%s3633_s21 + $0x250] sm:$0xff] }
  0x32   : > { %v465_v38 = vld [vmem:[%s3633_s21 + $0x260] sm:$0xff]  ;;  %462 = vst [vmem:[%s3638_s20 + $0x120] sm:$0xff] %v461_v36  ;;  %464 = vst [vmem:[%s3638_s20 + $0x128] sm:$0xff] %v463_v37  ;;  %v467_v39 = vld [vmem:[%s3633_s21 + $0x270] sm:$0xff] }
  0x33   : > { %466 = vst [vmem:[%s3638_s20 + $0x130] sm:$0xff] %v465_v38  ;;  %v469_v40 = vld [vmem:[%s3633_s21 + $0x280] sm:$0xff]  ;;  %v471_v41 = vld [vmem:[%s3633_s21 + $0x290] sm:$0xff]  ;;  %468 = vst [vmem:[%s3638_s20 + $0x138] sm:$0xff] %v467_v39 }
  0x34   : > { %470 = vst [vmem:[%s3638_s20 + $0x140] sm:$0xff] %v469_v40  ;;  %472 = vst [vmem:[%s3638_s20 + $0x148] sm:$0xff] %v471_v41  ;;  %v473_v42 = vld [vmem:[%s3633_s21 + $0x2a0] sm:$0xff]  ;;  %v475_v43 = vld [vmem:[%s3633_s21 + $0x2b0] sm:$0xff] }
  0x35   : > { %v477_v44 = vld [vmem:[%s3633_s21 + $0x2c0] sm:$0xff]  ;;  %474 = vst [vmem:[%s3638_s20 + $0x150] sm:$0xff] %v473_v42  ;;  %476 = vst [vmem:[%s3638_s20 + $0x158] sm:$0xff] %v475_v43  ;;  %v479_v45 = vld [vmem:[%s3633_s21 + $0x2d0] sm:$0xff] }
  0x36   : > { %478 = vst [vmem:[%s3638_s20 + $0x160] sm:$0xff] %v477_v44  ;;  %v481_v46 = vld [vmem:[%s3633_s21 + $0x2e0] sm:$0xff]  ;;  %v483_v47 = vld [vmem:[%s3633_s21 + $0x2f0] sm:$0xff]  ;;  %480 = vst [vmem:[%s3638_s20 + $0x168] sm:$0xff] %v479_v45 }
  0x37   : > { %482 = vst [vmem:[%s3638_s20 + $0x170] sm:$0xff] %v481_v46  ;;  %484 = vst [vmem:[%s3638_s20 + $0x178] sm:$0xff] %v483_v47  ;;  %v485_v48 = vld [vmem:[%s3633_s21 + $0x300] sm:$0xff]  ;;  %v487_v49 = vld [vmem:[%s3633_s21 + $0x310] sm:$0xff] }
  0x38   : > { %v489_v50 = vld [vmem:[%s3633_s21 + $0x320] sm:$0xff]  ;;  %486 = vst [vmem:[%s3638_s20 + $0x180] sm:$0xff] %v485_v48  ;;  %488 = vst [vmem:[%s3638_s20 + $0x188] sm:$0xff] %v487_v49  ;;  %v491_v51 = vld [vmem:[%s3633_s21 + $0x330] sm:$0xff] }
  0x39   : > { %490 = vst [vmem:[%s3638_s20 + $0x190] sm:$0xff] %v489_v50  ;;  %v493_v52 = vld [vmem:[%s3633_s21 + $0x340] sm:$0xff]  ;;  %v495_v53 = vld [vmem:[%s3633_s21 + $0x350] sm:$0xff]  ;;  %492 = vst [vmem:[%s3638_s20 + $0x198] sm:$0xff] %v491_v51 }
  0x3a   : > { %494 = vst [vmem:[%s3638_s20 + $0x1a0] sm:$0xff] %v493_v52  ;;  %496 = vst [vmem:[%s3638_s20 + $0x1a8] sm:$0xff] %v495_v53  ;;  %v497_v54 = vld [vmem:[%s3633_s21 + $0x360] sm:$0xff]  ;;  %v499_v55 = vld [vmem:[%s3633_s21 + $0x370] sm:$0xff] }
  0x3b   : > { %v501_v56 = vld [vmem:[%s3633_s21 + $0x380] sm:$0xff]  ;;  %498 = vst [vmem:[%s3638_s20 + $0x1b0] sm:$0xff] %v497_v54  ;;  %500 = vst [vmem:[%s3638_s20 + $0x1b8] sm:$0xff] %v499_v55  ;;  %v503_v57 = vld [vmem:[%s3633_s21 + $0x390] sm:$0xff] }
  0x3c   : > { %502 = vst [vmem:[%s3638_s20 + $0x1c0] sm:$0xff] %v501_v56  ;;  %v505_v58 = vld [vmem:[%s3633_s21 + $0x3a0] sm:$0xff]  ;;  %v507_v59 = vld [vmem:[%s3633_s21 + $0x3b0] sm:$0xff]  ;;  %504 = vst [vmem:[%s3638_s20 + $0x1c8] sm:$0xff] %v503_v57 }
  0x3d   : > { %506 = vst [vmem:[%s3638_s20 + $0x1d0] sm:$0xff] %v505_v58  ;;  %508 = vst [vmem:[%s3638_s20 + $0x1d8] sm:$0xff] %v507_v59  ;;  %v509_v60 = vld [vmem:[%s3633_s21 + $0x3c0] sm:$0xff]  ;;  %v511_v61 = vld [vmem:[%s3633_s21 + $0x3d0] sm:$0xff] }
  0x3e   : > { %v513_v62 = vld [vmem:[%s3633_s21 + $0x3e0] sm:$0xff]  ;;  %510 = vst [vmem:[%s3638_s20 + $0x1e0] sm:$0xff] %v509_v60  ;;  %512 = vst [vmem:[%s3638_s20 + $0x1e8] sm:$0xff] %v511_v61  ;;  %v515_v63 = vld [vmem:[%s3633_s21 + $0x3f0] sm:$0xff] }
  0x3f   : > { %514 = vst [vmem:[%s3638_s20 + $0x1f0] sm:$0xff] %v513_v62  ;;  %v517_v0 = vld [vmem:[%s3633_s21 + $0x400] sm:$0xff]  ;;  %v519_v1 = vld [vmem:[%s3633_s21 + $0x410] sm:$0xff]  ;;  %516 = vst [vmem:[%s3638_s20 + $0x1f8] sm:$0xff] %v515_v63 }
  0x40   : > { %518 = vst [vmem:[%s3638_s20 + $0x200] sm:$0xff] %v517_v0  ;;  %520 = vst [vmem:[%s3638_s20 + $0x208] sm:$0xff] %v519_v1  ;;  %v521_v2 = vld [vmem:[%s3633_s21 + $0x420] sm:$0xff]  ;;  %v523_v3 = vld [vmem:[%s3633_s21 + $0x430] sm:$0xff] }
  0x41   : > { %v525_v4 = vld [vmem:[%s3633_s21 + $0x440] sm:$0xff]  ;;  %522 = vst [vmem:[%s3638_s20 + $0x210] sm:$0xff] %v521_v2  ;;  %524 = vst [vmem:[%s3638_s20 + $0x218] sm:$0xff] %v523_v3  ;;  %v527_v5 = vld [vmem:[%s3633_s21 + $0x450] sm:$0xff] }
  0x42   : > { %526 = vst [vmem:[%s3638_s20 + $0x220] sm:$0xff] %v525_v4  ;;  %v529_v6 = vld [vmem:[%s3633_s21 + $0x460] sm:$0xff]  ;;  %v531_v7 = vld [vmem:[%s3633_s21 + $0x470] sm:$0xff]  ;;  %528 = vst [vmem:[%s3638_s20 + $0x228] sm:$0xff] %v527_v5 }
  0x43   : > { %530 = vst [vmem:[%s3638_s20 + $0x230] sm:$0xff] %v529_v6  ;;  %532 = vst [vmem:[%s3638_s20 + $0x238] sm:$0xff] %v531_v7  ;;  %v533_v8 = vld [vmem:[%s3633_s21 + $0x480] sm:$0xff]  ;;  %v535_v9 = vld [vmem:[%s3633_s21 + $0x490] sm:$0xff] }
  0x44   : > { %v537_v10 = vld [vmem:[%s3633_s21 + $0x4a0] sm:$0xff]  ;;  %534 = vst [vmem:[%s3638_s20 + $0x240] sm:$0xff] %v533_v8  ;;  %536 = vst [vmem:[%s3638_s20 + $0x248] sm:$0xff] %v535_v9  ;;  %v539_v11 = vld [vmem:[%s3633_s21 + $0x4b0] sm:$0xff] }
  0x45   : > { %538 = vst [vmem:[%s3638_s20 + $0x250] sm:$0xff] %v537_v10  ;;  %v541_v12 = vld [vmem:[%s3633_s21 + $0x4c0] sm:$0xff]  ;;  %v543_v13 = vld [vmem:[%s3633_s21 + $0x4d0] sm:$0xff]  ;;  %540 = vst [vmem:[%s3638_s20 + $0x258] sm:$0xff] %v539_v11 }
  0x46   : > { %542 = vst [vmem:[%s3638_s20 + $0x260] sm:$0xff] %v541_v12  ;;  %544 = vst [vmem:[%s3638_s20 + $0x268] sm:$0xff] %v543_v13  ;;  %v545_v14 = vld [vmem:[%s3633_s21 + $0x4e0] sm:$0xff]  ;;  %v547_v15 = vld [vmem:[%s3633_s21 + $0x4f0] sm:$0xff] }
  0x47   : > { %v549_v16 = vld [vmem:[%s3633_s21 + $0x500] sm:$0xff]  ;;  %546 = vst [vmem:[%s3638_s20 + $0x270] sm:$0xff] %v545_v14  ;;  %548 = vst [vmem:[%s3638_s20 + $0x278] sm:$0xff] %v547_v15  ;;  %v551_v17 = vld [vmem:[%s3633_s21 + $0x510] sm:$0xff] }
  0x48   : > { %550 = vst [vmem:[%s3638_s20 + $0x280] sm:$0xff] %v549_v16  ;;  %v553_v18 = vld [vmem:[%s3633_s21 + $0x520] sm:$0xff]  ;;  %v555_v19 = vld [vmem:[%s3633_s21 + $0x530] sm:$0xff]  ;;  %552 = vst [vmem:[%s3638_s20 + $0x288] sm:$0xff] %v551_v17 }
  0x49   : > { %554 = vst [vmem:[%s3638_s20 + $0x290] sm:$0xff] %v553_v18  ;;  %556 = vst [vmem:[%s3638_s20 + $0x298] sm:$0xff] %v555_v19  ;;  %v557_v20 = vld [vmem:[%s3633_s21 + $0x540] sm:$0xff]  ;;  %v559_v21 = vld [vmem:[%s3633_s21 + $0x550] sm:$0xff] }
  0x4a   : > { %v561_v22 = vld [vmem:[%s3633_s21 + $0x560] sm:$0xff]  ;;  %558 = vst [vmem:[%s3638_s20 + $0x2a0] sm:$0xff] %v557_v20  ;;  %560 = vst [vmem:[%s3638_s20 + $0x2a8] sm:$0xff] %v559_v21  ;;  %v563_v23 = vld [vmem:[%s3633_s21 + $0x570] sm:$0xff] }
  0x4b   : > { %562 = vst [vmem:[%s3638_s20 + $0x2b0] sm:$0xff] %v561_v22  ;;  %v565_v24 = vld [vmem:[%s3633_s21 + $0x580] sm:$0xff]  ;;  %v567_v25 = vld [vmem:[%s3633_s21 + $0x590] sm:$0xff]  ;;  %564 = vst [vmem:[%s3638_s20 + $0x2b8] sm:$0xff] %v563_v23 }
  0x4c   : > { %566 = vst [vmem:[%s3638_s20 + $0x2c0] sm:$0xff] %v565_v24  ;;  %568 = vst [vmem:[%s3638_s20 + $0x2c8] sm:$0xff] %v567_v25  ;;  %v569_v26 = vld [vmem:[%s3633_s21 + $0x5a0] sm:$0xff]  ;;  %v571_v27 = vld [vmem:[%s3633_s21 + $0x5b0] sm:$0xff] }
  0x4d   : > { %v573_v28 = vld [vmem:[%s3633_s21 + $0x5c0] sm:$0xff]  ;;  %570 = vst [vmem:[%s3638_s20 + $0x2d0] sm:$0xff] %v569_v26  ;;  %572 = vst [vmem:[%s3638_s20 + $0x2d8] sm:$0xff] %v571_v27  ;;  %v575_v29 = vld [vmem:[%s3633_s21 + $0x5d0] sm:$0xff] }
  0x4e   : > { %574 = vst [vmem:[%s3638_s20 + $0x2e0] sm:$0xff] %v573_v28  ;;  %v577_v30 = vld [vmem:[%s3633_s21 + $0x5e0] sm:$0xff]  ;;  %v579_v31 = vld [vmem:[%s3633_s21 + $0x5f0] sm:$0xff]  ;;  %576 = vst [vmem:[%s3638_s20 + $0x2e8] sm:$0xff] %v575_v29 }
  0x4f   : > { %578 = vst [vmem:[%s3638_s20 + $0x2f0] sm:$0xff] %v577_v30  ;;  %580 = vst [vmem:[%s3638_s20 + $0x2f8] sm:$0xff] %v579_v31  ;;  %v581_v32 = vld [vmem:[%s3633_s21 + $0x600] sm:$0xff]  ;;  %v583_v33 = vld [vmem:[%s3633_s21 + $0x610] sm:$0xff] }
  0x50   : > { %v585_v34 = vld [vmem:[%s3633_s21 + $0x620] sm:$0xff]  ;;  %582 = vst [vmem:[%s3638_s20 + $0x300] sm:$0xff] %v581_v32  ;;  %584 = vst [vmem:[%s3638_s20 + $0x308] sm:$0xff] %v583_v33  ;;  %v587_v35 = vld [vmem:[%s3633_s21 + $0x630] sm:$0xff] }
  0x51   : > { %586 = vst [vmem:[%s3638_s20 + $0x310] sm:$0xff] %v585_v34  ;;  %v589_v36 = vld [vmem:[%s3633_s21 + $0x640] sm:$0xff]  ;;  %v591_v37 = vld [vmem:[%s3633_s21 + $0x650] sm:$0xff]  ;;  %588 = vst [vmem:[%s3638_s20 + $0x318] sm:$0xff] %v587_v35 }
  0x52   : > { %590 = vst [vmem:[%s3638_s20 + $0x320] sm:$0xff] %v589_v36  ;;  %592 = vst [vmem:[%s3638_s20 + $0x328] sm:$0xff] %v591_v37  ;;  %v593_v38 = vld [vmem:[%s3633_s21 + $0x660] sm:$0xff]  ;;  %v595_v39 = vld [vmem:[%s3633_s21 + $0x670] sm:$0xff] }
  0x53   : > { %v597_v40 = vld [vmem:[%s3633_s21 + $0x680] sm:$0xff]  ;;  %594 = vst [vmem:[%s3638_s20 + $0x330] sm:$0xff] %v593_v38  ;;  %596 = vst [vmem:[%s3638_s20 + $0x338] sm:$0xff] %v595_v39  ;;  %v599_v41 = vld [vmem:[%s3633_s21 + $0x690] sm:$0xff] }
  0x54   : > { %598 = vst [vmem:[%s3638_s20 + $0x340] sm:$0xff] %v597_v40  ;;  %v601_v42 = vld [vmem:[%s3633_s21 + $0x6a0] sm:$0xff]  ;;  %v603_v43 = vld [vmem:[%s3633_s21 + $0x6b0] sm:$0xff]  ;;  %600 = vst [vmem:[%s3638_s20 + $0x348] sm:$0xff] %v599_v41 }
  0x55   : > { %602 = vst [vmem:[%s3638_s20 + $0x350] sm:$0xff] %v601_v42  ;;  %604 = vst [vmem:[%s3638_s20 + $0x358] sm:$0xff] %v603_v43  ;;  %v605_v44 = vld [vmem:[%s3633_s21 + $0x6c0] sm:$0xff]  ;;  %v607_v45 = vld [vmem:[%s3633_s21 + $0x6d0] sm:$0xff] }
  0x56   : > { %v609_v46 = vld [vmem:[%s3633_s21 + $0x6e0] sm:$0xff]  ;;  %606 = vst [vmem:[%s3638_s20 + $0x360] sm:$0xff] %v605_v44  ;;  %608 = vst [vmem:[%s3638_s20 + $0x368] sm:$0xff] %v607_v45  ;;  %v611_v47 = vld [vmem:[%s3633_s21 + $0x6f0] sm:$0xff] }
  0x57   : > { %610 = vst [vmem:[%s3638_s20 + $0x370] sm:$0xff] %v609_v46  ;;  %v613_v48 = vld [vmem:[%s3633_s21 + $0x700] sm:$0xff]  ;;  %v615_v49 = vld [vmem:[%s3633_s21 + $0x710] sm:$0xff]  ;;  %612 = vst [vmem:[%s3638_s20 + $0x378] sm:$0xff] %v611_v47 }
  0x58   : > { %614 = vst [vmem:[%s3638_s20 + $0x380] sm:$0xff] %v613_v48  ;;  %616 = vst [vmem:[%s3638_s20 + $0x388] sm:$0xff] %v615_v49  ;;  %v617_v50 = vld [vmem:[%s3633_s21 + $0x720] sm:$0xff]  ;;  %v619_v51 = vld [vmem:[%s3633_s21 + $0x730] sm:$0xff] }
  0x59   : > { %v621_v52 = vld [vmem:[%s3633_s21 + $0x740] sm:$0xff]  ;;  %618 = vst [vmem:[%s3638_s20 + $0x390] sm:$0xff] %v617_v50  ;;  %620 = vst [vmem:[%s3638_s20 + $0x398] sm:$0xff] %v619_v51  ;;  %v623_v53 = vld [vmem:[%s3633_s21 + $0x750] sm:$0xff] }
  0x5a   : > { %622 = vst [vmem:[%s3638_s20 + $0x3a0] sm:$0xff] %v621_v52  ;;  %v625_v54 = vld [vmem:[%s3633_s21 + $0x760] sm:$0xff]  ;;  %v627_v55 = vld [vmem:[%s3633_s21 + $0x770] sm:$0xff]  ;;  %624 = vst [vmem:[%s3638_s20 + $0x3a8] sm:$0xff] %v623_v53 }
  0x5b   : > { %626 = vst [vmem:[%s3638_s20 + $0x3b0] sm:$0xff] %v625_v54  ;;  %628 = vst [vmem:[%s3638_s20 + $0x3b8] sm:$0xff] %v627_v55  ;;  %v629_v56 = vld [vmem:[%s3633_s21 + $0x780] sm:$0xff]  ;;  %v631_v57 = vld [vmem:[%s3633_s21 + $0x790] sm:$0xff] }
  0x5c   : > { %v633_v58 = vld [vmem:[%s3633_s21 + $0x7a0] sm:$0xff]  ;;  %630 = vst [vmem:[%s3638_s20 + $0x3c0] sm:$0xff] %v629_v56  ;;  %632 = vst [vmem:[%s3638_s20 + $0x3c8] sm:$0xff] %v631_v57  ;;  %v635_v59 = vld [vmem:[%s3633_s21 + $0x7b0] sm:$0xff] }
  0x5d   : > { %634 = vst [vmem:[%s3638_s20 + $0x3d0] sm:$0xff] %v633_v58  ;;  %v637_v60 = vld [vmem:[%s3633_s21 + $0x7c0] sm:$0xff]  ;;  %v639_v61 = vld [vmem:[%s3633_s21 + $0x7d0] sm:$0xff]  ;;  %636 = vst [vmem:[%s3638_s20 + $0x3d8] sm:$0xff] %v635_v59 }
  0x5e   : > { %638 = vst [vmem:[%s3638_s20 + $0x3e0] sm:$0xff] %v637_v60  ;;  %640 = vst [vmem:[%s3638_s20 + $0x3e8] sm:$0xff] %v639_v61  ;;  %v641_v62 = vld [vmem:[%s3633_s21 + $0x7e0] sm:$0xff]  ;;  %v643_v63 = vld [vmem:[%s3633_s21 + $0x7f0] sm:$0xff] }
  0x5f   : > { %642 = vst [vmem:[%s3638_s20 + $0x3f0] sm:$0xff] %v641_v62  ;;  %644 = vst [vmem:[%s3638_s20 + $0x3f8] sm:$0xff] %v643_v63 }
  0x60 PF: > { %p3312_p0 = scmp.ge.s32.totalorder %s3520_s15, 1  ;;  %p649_p1 = scmp.lt.s32.totalorder %s3520_s15, 5 }
  0x62   : > { %p650_p2 = pnand %p3312_p0, %p649_p1 }
  0x63   : > { %s656_s22 = sand.u32 (!%p650_p2), 1, %s3496_s9   ;;  %s672_s23 = sand.u32 (!%p650_p2), 1, %s3488_s7  }
  0x64   : > { %653 = sbr.rel (%p650_p2) target bundleno = 956 (0x3bc), region = 58  ;;  %s3313_s25 = sshll.u32 (!%p650_p2), %s656_s22, 10 }
  0x65   : > { %s3899_s26 = sshll.u32 (!%p650_p2), %s672_s23, 3  ;;  %s3901_s30 = scalar_lea.vmem (!%p650_p2), [#allocation3], %s3313_s25 }
  0x66   : > { %s674_s2 = scalar_lea.vmem (!%p650_p2), [#allocation4], %s3899_s26  ;;  %p3315_p3 = scmp.ne.s32.totalorder (!%p650_p2), %s3504_s11, 0 }
  0x69   : > { %679 = sbr.rel (%p3315_p3) target bundleno = 112 (0x70), region = 66 }
  0x6e   : > { %v3522_v0 = vmov 0.0  }
  0x6f   : > { %680 = vst [vmem:[#allocation2] sm:$0xff] %v3522_v0 }
  0x70 PF: > { %p3316_p4 = scmp.eq.s32.totalorder %s3504_s11, 1 }
  0x72   : > { %684 = sbr.rel (%p3316_p4) target bundleno = 518 (0x206), region = 70 }
  0x77   : > { %v688_v1 = vld [vmem:[%s3901_s30 + $0x10] sm:$0xff]  ;;  %v686_v2 = vld [vmem:[%s3901_s30] sm:$0xff]  ;;  %v689_v3 = vld [vmem:[%s3901_s30 + $0x18] sm:$0xff]  ;;  %vm1209_vm0 = vcmask 130112   ;;  %vm1216_vm1 = vcmask 195712   ;;  %vm1223_vm2 = vcmask 261312  }
  0x78   : > { %818 = vadd.xlane.f32.xlu1 %v688_v1  ;;  %814 = vadd.xlane.f32.xlu0 %v686_v2  ;;  %v687_v4 = vld [vmem:[%s3901_s30 + $0x8] sm:$0xff]  ;;  %v690_v6 = vld [vmem:[%s3901_s30 + $0x20] sm:$0xff]  ;;  %v693_v7 = vld [vmem:[%s3901_s30 + $0x38] sm:$0xff]  ;;  %vm1230_vm3 = vcmask 326912   ;;  %vm1237_vm4 = vcmask 392512   ;;  %vm1244_vm5 = vcmask 458112  }
  0x79   : > { %v691_v5 = vld [vmem:[%s3901_s30 + $0x28] sm:$0xff]  ;;  %v692_v8 = vld [vmem:[%s3901_s30 + $0x30] sm:$0xff]  ;;  %v694_v10 = vld [vmem:[%s3901_s30 + $0x40] sm:$0xff]  ;;  %vm1251_vm6 = vcmask 523712   ;;  %vm1258_vm7 = vcmask 589312   ;;  %vm1265_vm8 = vcmask 654912  }
  0x7a   : > { %v695_v9 = vld [vmem:[%s3901_s30 + $0x48] sm:$0xff]  ;;  %v697_v11 = vld [vmem:[%s3901_s30 + $0x58] sm:$0xff]  ;;  %v696_v12 = vld [vmem:[%s3901_s30 + $0x50] sm:$0xff]  ;;  %vm1272_vm9 = vcmask 720512   ;;  %vm1279_vm10 = vcmask 786112   ;;  %vm1286_vm11 = vcmask 851712  }
  0x7b   : > { %v699_v13 = vld [vmem:[%s3901_s30 + $0x68] sm:$0xff]  ;;  %v698_v14 = vld [vmem:[%s3901_s30 + $0x60] sm:$0xff]  ;;  %v701_v15 = vld [vmem:[%s3901_s30 + $0x78] sm:$0xff]  ;;  %vm1293_vm12 = vcmask 917312   ;;  %vm1300_vm13 = vcmask 982912   ;;  %vm1307_vm14 = vcmask 1048512  }
  0x7c   : > { %820 = vadd.xlane.f32.xlu1 %v689_v3  ;;  %816 = vadd.xlane.f32.xlu0 %v687_v4  ;;  %v700_v16 = vld [vmem:[%s3901_s30 + $0x70] sm:$0xff]  ;;  %v703_v17 = vld [vmem:[%s3901_s30 + $0x88] sm:$0xff]  ;;  %v702_v18 = vld [vmem:[%s3901_s30 + $0x80] sm:$0xff]  ;;  %v1198_v3 = vlaneseq  ;;  %vm1862_vm15 = vcmask 1041409  }
  0x7d   : > { %v705_v19 = vld [vmem:[%s3901_s30 + $0x98] sm:$0xff]  ;;  %v704_v20 = vld [vmem:[%s3901_s30 + $0x90] sm:$0xff]  ;;  %v707_v21 = vld [vmem:[%s3901_s30 + $0xa8] sm:$0xff] }
  0x7e   : > { %v706_v22 = vld [vmem:[%s3901_s30 + $0xa0] sm:$0xff]  ;;  %v709_v23 = vld [vmem:[%s3901_s30 + $0xb8] sm:$0xff]  ;;  %v708_v24 = vld [vmem:[%s3901_s30 + $0xb0] sm:$0xff] }
  0x7f   : > { %v711_v25 = vld [vmem:[%s3901_s30 + $0xc8] sm:$0xff]  ;;  %v710_v26 = vld [vmem:[%s3901_s30 + $0xc0] sm:$0xff]  ;;  %v713_v27 = vld [vmem:[%s3901_s30 + $0xd8] sm:$0xff] }
  0x80   : > { %824 = vadd.xlane.f32.xlu1 %v691_v5  ;;  %822 = vadd.xlane.f32.xlu0 %v690_v6  ;;  %v712_v28 = vld [vmem:[%s3901_s30 + $0xd0] sm:$0xff]  ;;  %v715_v29 = vld [vmem:[%s3901_s30 + $0xe8] sm:$0xff]  ;;  %v714_v30 = vld [vmem:[%s3901_s30 + $0xe0] sm:$0xff]  ;;  %v3974_v6 = vand.u32 127, %v1198_v3 }
  0x81   : > { %v717_v31 = vld [vmem:[%s3901_s30 + $0xf8] sm:$0xff]  ;;  %v716_v32 = vld [vmem:[%s3901_s30 + $0xf0] sm:$0xff]  ;;  %v719_v33 = vld [vmem:[%s3901_s30 + $0x108] sm:$0xff] }
  0x82   : > { %v718_v34 = vld [vmem:[%s3901_s30 + $0x100] sm:$0xff]  ;;  %v721_v35 = vld [vmem:[%s3901_s30 + $0x118] sm:$0xff]  ;;  %v720_v36 = vld [vmem:[%s3901_s30 + $0x110] sm:$0xff] }
  0x83   : > { %v723_v37 = vld [vmem:[%s3901_s30 + $0x128] sm:$0xff]  ;;  %v722_v38 = vld [vmem:[%s3901_s30 + $0x120] sm:$0xff]  ;;  %v725_v39 = vld [vmem:[%s3901_s30 + $0x138] sm:$0xff] }
  0x84   : > { %828 = vadd.xlane.f32.xlu1 %v693_v7  ;;  %826 = vadd.xlane.f32.xlu0 %v692_v8  ;;  %v724_v40 = vld [vmem:[%s3901_s30 + $0x130] sm:$0xff]  ;;  %v727_v41 = vld [vmem:[%s3901_s30 + $0x148] sm:$0xff]  ;;  %v726_v42 = vld [vmem:[%s3901_s30 + $0x140] sm:$0xff] }
  0x85   : > { %v729_v43 = vld [vmem:[%s3901_s30 + $0x158] sm:$0xff]  ;;  %v728_v44 = vld [vmem:[%s3901_s30 + $0x150] sm:$0xff]  ;;  %v731_v45 = vld [vmem:[%s3901_s30 + $0x168] sm:$0xff] }
  0x86   : > { %v730_v46 = vld [vmem:[%s3901_s30 + $0x160] sm:$0xff]  ;;  %v733_v47 = vld [vmem:[%s3901_s30 + $0x178] sm:$0xff]  ;;  %v732_v48 = vld [vmem:[%s3901_s30 + $0x170] sm:$0xff] }
  0x87   : > { %v735_v49 = vld [vmem:[%s3901_s30 + $0x188] sm:$0xff]  ;;  %v734_v50 = vld [vmem:[%s3901_s30 + $0x180] sm:$0xff]  ;;  %v737_v51 = vld [vmem:[%s3901_s30 + $0x198] sm:$0xff] }
  0x88   : > { %832 = vadd.xlane.f32.xlu1 %v695_v9  ;;  %830 = vadd.xlane.f32.xlu0 %v694_v10  ;;  %v736_v52 = vld [vmem:[%s3901_s30 + $0x190] sm:$0xff]  ;;  %v739_v53 = vld [vmem:[%s3901_s30 + $0x1a8] sm:$0xff]  ;;  %v738_v54 = vld [vmem:[%s3901_s30 + $0x1a0] sm:$0xff]  ;;  %v3978_v9 = vshrl.u32 %v1198_v3, 7  ;;  %v1218_v10 = vadd.s32 4294967272, %v3974_v6  ;;  %v1281_v3 = vadd.s32 4294967200, %v3974_v6 }
  0x89   : > { %v741_v55 = vld [vmem:[%s3901_s30 + $0x1b8] sm:$0xff]  ;;  %v740_v56 = vld [vmem:[%s3901_s30 + $0x1b0] sm:$0xff]  ;;  %v743_v57 = vld [vmem:[%s3901_s30 + $0x1c8] sm:$0xff] }
  0x8a   : > { %v742_v58 = vld [vmem:[%s3901_s30 + $0x1c0] sm:$0xff]  ;;  %v745_v59 = vld [vmem:[%s3901_s30 + $0x1d8] sm:$0xff]  ;;  %v744_v60 = vld [vmem:[%s3901_s30 + $0x1d0] sm:$0xff] }
  0x8b   : > { %v747_v61 = vld [vmem:[%s3901_s30 + $0x1e8] sm:$0xff]  ;;  %v746_v62 = vld [vmem:[%s3901_s30 + $0x1e0] sm:$0xff]  ;;  %v749_v63 = vld [vmem:[%s3901_s30 + $0x1f8] sm:$0xff] }
  0x8c   : > { %836 = vadd.xlane.f32.xlu1 %v697_v11  ;;  %834 = vadd.xlane.f32.xlu0 %v696_v12  ;;  %v748_v0 = vld [vmem:[%s3901_s30 + $0x1f0] sm:$0xff]  ;;  %v751_v1 = vld [vmem:[%s3901_s30 + $0x208] sm:$0xff]  ;;  %v750_v2 = vld [vmem:[%s3901_s30 + $0x200] sm:$0xff]  ;;  %v1204_v11 = vadd.s32 4294967288, %v3974_v6  ;;  %v1211_v12 = vadd.s32 4294967280, %v3974_v6 }
  0x8d   : > { %v753_v4 = vld [vmem:[%s3901_s30 + $0x218] sm:$0xff]  ;;  %v752_v5 = vld [vmem:[%s3901_s30 + $0x210] sm:$0xff]  ;;  %v755_v7 = vld [vmem:[%s3901_s30 + $0x228] sm:$0xff] }
  0x8e   : > { %v754_v8 = vld [vmem:[%s3901_s30 + $0x220] sm:$0xff] }
  0x90   : > { %840 = vadd.xlane.f32.xlu1 %v699_v13  ;;  %838 = vadd.xlane.f32.xlu0 %v698_v14 }
  0x94   : > { %844 = vadd.xlane.f32.xlu1 %v701_v15  ;;  %842 = vadd.xlane.f32.xlu0 %v700_v16  ;;  %v757_v15 = vld [vmem:[%s3901_s30 + $0x238] sm:$0xff]  ;;  %v756_v16 = vld [vmem:[%s3901_s30 + $0x230] sm:$0xff] }
  0x98   : > { %848 = vadd.xlane.f32.xlu1 %v703_v17  ;;  %846 = vadd.xlane.f32.xlu0 %v702_v18  ;;  %v1232_v17 = vadd.s32 4294967256, %v3974_v6  ;;  %v1225_v18 = vadd.s32 4294967264, %v3974_v6 }
  0x9c   : > { %852 = vadd.xlane.f32.xlu1 %v705_v19  ;;  %850 = vadd.xlane.f32.xlu0 %v704_v20  ;;  %v3989_v19 = vsub.s32 %v3974_v6, %v3978_v9  ;;  %v3992_v20 = vsub.s32 %v1218_v10, %v3978_v9 }
  0xa0   : > { %856 = vadd.xlane.f32.xlu1 %v707_v21  ;;  %854 = vadd.xlane.f32.xlu0 %v706_v22  ;;  %v3995_v21 = vsub.s32 %v1204_v11, %v3978_v9  ;;  %v3998_v22 = vsub.s32 %v1211_v12, %v3978_v9 }
  0xa4   : > { %860 = vadd.xlane.f32.xlu1 %v709_v23  ;;  %858 = vadd.xlane.f32.xlu0 %v708_v24 }
  0xa8   : > { %864 = vadd.xlane.f32.xlu1 %v711_v25  ;;  %862 = vadd.xlane.f32.xlu0 %v710_v26  ;;  %v759_v25 = vld [vmem:[%s3901_s30 + $0x248] sm:$0xff]  ;;  %v758_v26 = vld [vmem:[%s3901_s30 + $0x240] sm:$0xff] }
  0xac   : > { %868 = vadd.xlane.f32.xlu1 %v713_v27  ;;  %866 = vadd.xlane.f32.xlu0 %v712_v28  ;;  %v4003_v27 = vsub.s32 %v1232_v17, %v3978_v9  ;;  %v4006_v28 = vsub.s32 %v1225_v18, %v3978_v9  ;;  %v4065_v17 = vsub.s32 %v1281_v3, %v3978_v9  ;;  %v800_v3 = vld [vmem:[%s3901_s30 + $0x390] sm:$0xff] }
  0xb0   : > { %872 = vadd.xlane.f32.xlu1 %v715_v29  ;;  %870 = vadd.xlane.f32.xlu0 %v714_v30  ;;  %v1239_v29 = vadd.s32 4294967248, %v3974_v6 }
  0xb4   : > { %876 = vadd.xlane.f32.xlu1 %v717_v31  ;;  %874 = vadd.xlane.f32.xlu0 %v716_v32 }
  0xb8   : > { %880 = vadd.xlane.f32.xlu1 %v719_v33  ;;  %878 = vadd.xlane.f32.xlu0 %v718_v34  ;;  %v1246_v33 = vadd.s32 4294967240, %v3974_v6 }
  0xbc   : > { %884 = vadd.xlane.f32.xlu1 %v721_v35  ;;  %882 = vadd.xlane.f32.xlu0 %v720_v36 }
  0xc0   : > { %888 = vadd.xlane.f32.xlu1 %v723_v37  ;;  %886 = vadd.xlane.f32.xlu0 %v722_v38 }
  0xc4   : > { %892 = vadd.xlane.f32.xlu1 %v725_v39  ;;  %890 = vadd.xlane.f32.xlu0 %v724_v40  ;;  %v761_v39 = vld [vmem:[%s3901_s30 + $0x258] sm:$0xff]  ;;  %v760_v40 = vld [vmem:[%s3901_s30 + $0x250] sm:$0xff] }
  0xc8   : > { %896 = vadd.xlane.f32.xlu1 %v727_v41  ;;  %894 = vadd.xlane.f32.xlu0 %v726_v42  ;;  %v4019_v41 = vsub.s32 %v1239_v29, %v3978_v9  ;;  %v1260_v42 = vadd.s32 4294967224, %v3974_v6 }
  0xcc   : > { %900 = vadd.xlane.f32.xlu1 %v729_v43  ;;  %898 = vadd.xlane.f32.xlu0 %v728_v44  ;;  %v1253_v43 = vadd.s32 4294967232, %v3974_v6 }
  0xd0   : > { %904 = vadd.xlane.f32.xlu1 %v731_v45  ;;  %902 = vadd.xlane.f32.xlu0 %v730_v46 }
  0xd4   : > { %908 = vadd.xlane.f32.xlu1 %v733_v47  ;;  %906 = vadd.xlane.f32.xlu0 %v732_v48  ;;  %v4027_v47 = vsub.s32 %v1246_v33, %v3978_v9  ;;  %v768_v33 = vld [vmem:[%s3901_s30 + $0x290] sm:$0xff] }
  0xd8   : > { %912 = vadd.xlane.f32.xlu1 %v735_v49  ;;  %910 = vadd.xlane.f32.xlu0 %v734_v50 }
  0xdc   : > { %916 = vadd.xlane.f32.xlu1 %v737_v51  ;;  %914 = vadd.xlane.f32.xlu0 %v736_v52  ;;  %v763_v52 = vld [vmem:[%s3901_s30 + $0x268] sm:$0xff] }
  0xe0   : > { %920 = vadd.xlane.f32.xlu1 %v739_v53  ;;  %918 = vadd.xlane.f32.xlu0 %v738_v54  ;;  %v762_v53 = vld [vmem:[%s3901_s30 + $0x260] sm:$0xff]  ;;  %v4034_v54 = vsub.s32 %v1260_v42, %v3978_v9  ;;  %v769_v42 = vld [vmem:[%s3901_s30 + $0x298] sm:$0xff] }
  0xe4   : > { %924 = vadd.xlane.f32.xlu1 %v741_v55  ;;  %922 = vadd.xlane.f32.xlu0 %v740_v56  ;;  %v4037_v55 = vsub.s32 %v1253_v43, %v3978_v9  ;;  %v783_v43 = vld [vmem:[%s3901_s30 + $0x308] sm:$0xff] }
  0xe8   : > { %928 = vadd.xlane.f32.xlu1 %v743_v57  ;;  %926 = vadd.xlane.f32.xlu0 %v742_v58  ;;  %v1274_v58 = vadd.s32 4294967208, %v3974_v6 }
  0xec   : > { %932 = vadd.xlane.f32.xlu1 %v745_v59  ;;  %930 = vadd.xlane.f32.xlu0 %v744_v60  ;;  %v1267_v59 = vadd.s32 4294967216, %v3974_v6 }
  0xf0   : > { %936 = vadd.xlane.f32.xlu1 %v747_v61  ;;  %934 = vadd.xlane.f32.xlu0 %v746_v62 }
  0xf4   : > { %940 = vadd.xlane.f32.xlu1 %v749_v63  ;;  %938 = vadd.xlane.f32.xlu0 %v748_v0  ;;  %v765_v0 = vld [vmem:[%s3901_s30 + $0x278] sm:$0xff] }
  0xf8   : > { %944 = vadd.xlane.f32.xlu1 %v751_v1  ;;  %942 = vadd.xlane.f32.xlu0 %v750_v2  ;;  %v764_v1 = vld [vmem:[%s3901_s30 + $0x270] sm:$0xff]  ;;  %v1288_v2 = vadd.s32 4294967192, %v3974_v6 }
  0xfc   : > { %948 = vadd.xlane.f32.xlu1 %v753_v4  ;;  %946 = vadd.xlane.f32.xlu0 %v752_v5 }
 0x100   : > { %952 = vadd.xlane.f32.xlu1 %v755_v7  ;;  %950 = vadd.xlane.f32.xlu0 %v754_v8  ;;  %v4052_v7 = vsub.s32 %v1274_v58, %v3978_v9  ;;  %v4055_v8 = vsub.s32 %v1267_v59, %v3978_v9  ;;  %v770_v59 = vld [vmem:[%s3901_s30 + $0x2a0] sm:$0xff] }
 0x101   : > { %v819_v13 = vpop.xlane.xlu1 %818  ;;  %v815_v14 = vpop.xlane.xlu0 %814 }
 0x102   : > { %v1203_v30 = vrot.slane %v815_v14, %v3989_v19  ;;  %v1215_v34 = vrot.slane %v819_v13, %v3998_v22  ;;  %v767_v14 = vld [vmem:[%s3901_s30 + $0x288] sm:$0xff] }
 0x104   : > { %956 = vadd.xlane.f32.xlu1 %v757_v15  ;;  %954 = vadd.xlane.f32.xlu0 %v756_v16  ;;  %v766_v15 = vld [vmem:[%s3901_s30 + $0x280] sm:$0xff]  ;;  %v4062_v16 = vsub.s32 %v1288_v2, %v3978_v9 }
 0x105   : > { %v821_v23 = vpop.xlane.xlu1 %820  ;;  %v817_v24 = vpop.xlane.xlu0 %816 }
 0x106   : > { %v1222_v31 = vrot.slane %v821_v23, %v3992_v20  ;;  %v1208_v32 = vrot.slane %v817_v24, %v3995_v21  ;;  %v1302_v24 = vadd.s32 4294967176, %v3974_v6 }
 0x108   : > { %v1210_v35 = vsel %vm1209_vm0, %v1208_v32, %v1203_v30  ;;  %960 = vadd.xlane.f32.xlu1 %v759_v25  ;;  %958 = vadd.xlane.f32.xlu0 %v758_v26  ;;  %v1295_v25 = vadd.s32 4294967184, %v3974_v6  ;;  %v782_v32 = vld [vmem:[%s3901_s30 + $0x300] sm:$0xff]  ;;  %v4078_v6 = vsub.s32 %v1302_v24, %v3978_v9 }
 0x109   : > { %v1217_v36 = vsel %vm1216_vm1, %v1215_v34, %v1210_v35  ;;  %v825_v37 = vpop.xlane.xlu1 %824  ;;  %v823_v38 = vpop.xlane.xlu0 %822 }
 0x10a   : > { %v1236_v44 = vrot.slane %v825_v37, %v4003_v27  ;;  %v1224_v45 = vsel %vm1223_vm2, %v1222_v31, %v1217_v36  ;;  %v1229_v46 = vrot.slane %v823_v38, %v4006_v28  ;;  %v4081_v36 = vsub.s32 %v1295_v25, %v3978_v9 }
 0x10c   : > { %v1231_v48 = vsel %vm1230_vm3, %v1229_v46, %v1224_v45  ;;  %964 = vadd.xlane.f32.xlu1 %v761_v39  ;;  %962 = vadd.xlane.f32.xlu0 %v760_v40 }
 0x10d   : > { %v829_v49 = vpop.xlane.xlu1 %828  ;;  %v1238_v50 = vsel %vm1237_vm4, %v1236_v44, %v1231_v48  ;;  %v827_v51 = vpop.xlane.xlu0 %826 }
 0x10e   : > { %v1250_v56 = vrot.slane %v829_v49, %v4027_v47  ;;  %v1243_v57 = vrot.slane %v827_v51, %v4019_v41  ;;  %v784_v51 = vld [vmem:[%s3901_s30 + $0x310] sm:$0xff] }
 0x110   : > { %v1245_v60 = vsel %vm1244_vm5, %v1243_v57, %v1238_v50  ;;  %968 = vadd.xlane.f32.xlu1 %v763_v52  ;;  %966 = vadd.xlane.f32.xlu0 %v762_v53  ;;  %v798_v50 = vld [vmem:[%s3901_s30 + $0x380] sm:$0xff] }
 0x111   : > { %v833_v61 = vpop.xlane.xlu1 %832  ;;  %v1252_v62 = vsel %vm1251_vm6, %v1250_v56, %v1245_v60  ;;  %v831_v63 = vpop.xlane.xlu0 %830  ;;  %v799_v60 = vld [vmem:[%s3901_s30 + $0x388] sm:$0xff] }
 0x112   : > { %v1264_v4 = vrot.slane %v833_v61, %v4034_v54  ;;  %v1257_v5 = vrot.slane %v831_v63, %v4037_v55 }
 0x114   : > { %v1259_v10 = vsel %vm1258_vm7, %v1257_v5, %v1252_v62  ;;  %972 = vadd.xlane.f32.xlu1 %v765_v0  ;;  %970 = vadd.xlane.f32.xlu0 %v764_v1 }
 0x115   : > { %v837_v11 = vpop.xlane.xlu1 %836  ;;  %v1266_v12 = vsel %vm1265_vm8, %v1264_v4, %v1259_v10  ;;  %v835_v13 = vpop.xlane.xlu0 %834  ;;  %v785_v4 = vld [vmem:[%s3901_s30 + $0x318] sm:$0xff] }
 0x116   : > { %v1278_v18 = vrot.slane %v837_v11, %v4052_v7  ;;  %v1271_v23 = vrot.slane %v835_v13, %v4055_v8 }
 0x118   : > { %v1273_v26 = vsel %vm1272_vm9, %v1271_v23, %v1266_v12  ;;  %976 = vadd.xlane.f32.xlu1 %v767_v14  ;;  %974 = vadd.xlane.f32.xlu0 %v766_v15  ;;  %v786_v15 = vld [vmem:[%s3901_s30 + $0x320] sm:$0xff] }
 0x119   : > { %v841_v29 = vpop.xlane.xlu1 %840  ;;  %v1280_v30 = vsel %vm1279_vm10, %v1278_v18, %v1273_v26  ;;  %v839_v31 = vpop.xlane.xlu0 %838  ;;  %v771_v18 = vld [vmem:[%s3901_s30 + $0x2a8] sm:$0xff] }
 0x11a   : > { %v1292_v34 = vrot.slane %v841_v29, %v4062_v16  ;;  %v1285_v35 = vrot.slane %v839_v31, %v4065_v17  ;;  %v772_v31 = vld [vmem:[%s3901_s30 + $0x2b0] sm:$0xff] }
 0x11c   : > { %v1287_v37 = vsel %vm1286_vm11, %v1285_v35, %v1280_v30  ;;  %1006 = vadd.xlane.f32.xlu1 %v782_v32  ;;  %978 = vadd.xlane.f32.xlu0 %v768_v33  ;;  %v801_v32 = vld [vmem:[%s3901_s30 + $0x398] sm:$0xff] }
 0x11d   : > { %v845_v38 = vpop.xlane.xlu1 %844  ;;  %v1294_v39 = vsel %vm1293_vm12, %v1292_v34, %v1287_v37  ;;  %v843_v40 = vpop.xlane.xlu0 %842 }
 0x11e   : > { %v1306_v44 = vrot.slane %v845_v38, %v4078_v6  ;;  %v1299_v45 = vrot.slane %v843_v40, %v4081_v36  ;;  %v802_v40 = vld [vmem:[%s3901_s30 + $0x3a0] sm:$0xff] }
 0x120   : > { %v1301_v9 = vsel %vm1300_vm13, %v1299_v45, %v1294_v39  ;;  %980 = vadd.xlane.f32.xlu1 %v769_v42  ;;  %1008 = vadd.xlane.f32.xlu0 %v783_v43  ;;  %v787_v42 = vld [vmem:[%s3901_s30 + $0x328] sm:$0xff] }
 0x121   : > { %v4091_v46 = vsel %vm1307_vm14, %v1306_v44, %v1301_v9  ;;  %v849_v48 = vpop.xlane.xlu1 %848  ;;  %v847_v49 = vpop.xlane.xlu0 %846 }
 0x122   : > { %v1316_v52 = vrot.slane %v849_v48, %v3995_v21  ;;  %v1312_v53 = vrot.slane %v847_v49, %v3989_v19 }
 0x124   : > { %v1317_v56 = vsel %vm1209_vm0, %v1316_v52, %v1312_v53  ;;  %1038 = vadd.xlane.f32.xlu1 %v798_v50  ;;  %1010 = vadd.xlane.f32.xlu0 %v784_v51  ;;  %v788_v50 = vld [vmem:[%s3901_s30 + $0x330] sm:$0xff]  ;;  %v773_v51 = vld [vmem:[%s3901_s30 + $0x2b8] sm:$0xff] }
 0x125   : > { %v853_v57 = vpop.xlane.xlu1 %852  ;;  %v851_v58 = vpop.xlane.xlu0 %850 }
 0x126   : > { %v1326_v61 = vrot.slane %v853_v57, %v3992_v20  ;;  %v1321_v62 = vrot.slane %v851_v58, %v3998_v22 }
 0x128   : > { %v1322_v63 = vsel %vm1216_vm1, %v1321_v62, %v1317_v56  ;;  %982 = vadd.xlane.f32.xlu1 %v770_v59  ;;  %1040 = vadd.xlane.f32.xlu0 %v799_v60  ;;  %v774_v60 = vld [vmem:[%s3901_s30 + $0x2c0] sm:$0xff] }
 0x129   : > { %v857_v0 = vpop.xlane.xlu1 %856  ;;  %v1327_v1 = vsel %vm1223_vm2, %v1326_v61, %v1322_v63  ;;  %v855_v2 = vpop.xlane.xlu0 %854  ;;  %v803_v61 = vld [vmem:[%s3901_s30 + $0x3a8] sm:$0xff] }
 0x12a   : > { %v1336_v5 = vrot.slane %v857_v0, %v4003_v27  ;;  %v1331_v10 = vrot.slane %v855_v2, %v4006_v28 }
 0x12c   : > { %v1332_v11 = vsel %vm1230_vm3, %v1331_v10, %v1327_v1  ;;  %1042 = vadd.xlane.f32.xlu1 %v800_v3  ;;  %1012 = vadd.xlane.f32.xlu0 %v785_v4  ;;  %v804_v4 = vld [vmem:[%s3901_s30 + $0x3b0] sm:$0xff] }
 0x12d   : > { %v861_v12 = vpop.xlane.xlu1 %860  ;;  %v1337_v13 = vsel %vm1237_vm4, %v1336_v5, %v1332_v11  ;;  %v859_v14 = vpop.xlane.xlu0 %858  ;;  %v789_v5 = vld [vmem:[%s3901_s30 + $0x338] sm:$0xff] }
 0x12e   : > { %v1346_v23 = vrot.slane %v861_v12, %v4027_v47  ;;  %v1341_v24 = vrot.slane %v859_v14, %v4019_v41 }
 0x130   : > { %v1342_v25 = vsel %vm1244_vm5, %v1341_v24, %v1337_v13  ;;  %1014 = vadd.xlane.f32.xlu1 %v786_v15  ;;  %984 = vadd.xlane.f32.xlu0 %v771_v18  ;;  %v790_v18 = vld [vmem:[%s3901_s30 + $0x340] sm:$0xff] }
 0x131   : > { %v865_v26 = vpop.xlane.xlu1 %864  ;;  %v1347_v29 = vsel %vm1251_vm6, %v1346_v23, %v1342_v25  ;;  %v863_v30 = vpop.xlane.xlu0 %862  ;;  %v775_v23 = vld [vmem:[%s3901_s30 + $0x2c8] sm:$0xff] }
 0x132   : > { %v1356_v33 = vrot.slane %v865_v26, %v4034_v54  ;;  %v1351_v34 = vrot.slane %v863_v30, %v4037_v55 }
 0x134   : > { %v1352_v35 = vsel %vm1258_vm7, %v1351_v34, %v1347_v29  ;;  %986 = vadd.xlane.f32.xlu1 %v772_v31  ;;  %1044 = vadd.xlane.f32.xlu0 %v801_v32  ;;  %v776_v31 = vld [vmem:[%s3901_s30 + $0x2d0] sm:$0xff]  ;;  %v805_v32 = vld [vmem:[%s3901_s30 + $0x3b8] sm:$0xff] }
 0x135   : > { %v869_v37 = vpop.xlane.xlu1 %868  ;;  %v1357_v38 = vsel %vm1265_vm8, %v1356_v33, %v1352_v35  ;;  %v867_v39 = vpop.xlane.xlu0 %866 }
 0x136   : > { %v1366_v43 = vrot.slane %v869_v37, %v4052_v7  ;;  %v1361_v44 = vrot.slane %v867_v39, %v4055_v8 }
 0x138   : > { %v1362_v45 = vsel %vm1272_vm9, %v1361_v44, %v1357_v38  ;;  %1046 = vadd.xlane.f32.xlu1 %v802_v40  ;;  %1016 = vadd.xlane.f32.xlu0 %v787_v42  ;;  %v806_v40 = vld [vmem:[%s3901_s30 + $0x3c0] sm:$0xff]  ;;  %v791_v42 = vld [vmem:[%s3901_s30 + $0x348] sm:$0xff] }
 0x139   : > { %v873_v9 = vpop.xlane.xlu1 %872  ;;  %v1367_v48 = vsel %vm1279_vm10, %v1366_v43, %v1362_v45  ;;  %v871_v49 = vpop.xlane.xlu0 %870 }
 0x13a   : > { %v1376_v52 = vrot.slane %v873_v9, %v4062_v16  ;;  %v1371_v53 = vrot.slane %v871_v49, %v4065_v17 }
 0x13c   : > { %v1372_v56 = vsel %vm1286_vm11, %v1371_v53, %v1367_v48  ;;  %1018 = vadd.xlane.f32.xlu1 %v788_v50  ;;  %988 = vadd.xlane.f32.xlu0 %v773_v51  ;;  %v792_v50 = vld [vmem:[%s3901_s30 + $0x350] sm:$0xff]  ;;  %v777_v51 = vld [vmem:[%s3901_s30 + $0x2d8] sm:$0xff] }
 0x13d   : > { %v877_v57 = vpop.xlane.xlu1 %876  ;;  %v1377_v58 = vsel %vm1293_vm12, %v1376_v52, %v1372_v56  ;;  %v875_v59 = vpop.xlane.xlu0 %874 }
 0x13e   : > { %v1386_v62 = vrot.slane %v877_v57, %v4078_v6  ;;  %v1381_v63 = vrot.slane %v875_v59, %v4081_v36 }
 0x140   : > { %v1382_v0 = vsel %vm1300_vm13, %v1381_v63, %v1377_v58  ;;  %990 = vadd.xlane.f32.xlu1 %v774_v60  ;;  %1048 = vadd.xlane.f32.xlu0 %v803_v61  ;;  %v778_v60 = vld [vmem:[%s3901_s30 + $0x2e0] sm:$0xff]  ;;  %v807_v61 = vld [vmem:[%s3901_s30 + $0x3c8] sm:$0xff] }
 0x141   : > { %v1387_v1 = vsel %vm1307_vm14, %v1386_v62, %v1382_v0  ;;  %v881_v2 = vpop.xlane.xlu1 %880  ;;  %v879_v3 = vpop.xlane.xlu0 %878 }
 0x142   : > { %v4143_v10 = vsel %vm1862_vm15, %v1387_v1, %v4091_v46  ;;  %v1395_v11 = vrot.slane %v881_v2, %v3995_v21  ;;  %v1391_v12 = vrot.slane %v879_v3, %v3989_v19  ;;  %vm1864_vm15 = vcmask 1042434  }
 0x144   : > { %v1396_v13 = vsel %vm1209_vm0, %v1395_v11, %v1391_v12  ;;  %1050 = vadd.xlane.f32.xlu1 %v804_v4  ;;  %1020 = vadd.xlane.f32.xlu0 %v789_v5  ;;  %v808_v4 = vld [vmem:[%s3901_s30 + $0x3d0] sm:$0xff]  ;;  %v793_v5 = vld [vmem:[%s3901_s30 + $0x358] sm:$0xff] }
 0x145   : > { %v885_v14 = vpop.xlane.xlu1 %884  ;;  %v883_v15 = vpop.xlane.xlu0 %882 }
 0x146   : > { %v1405_v24 = vrot.slane %v885_v14, %v3992_v20  ;;  %v1400_v25 = vrot.slane %v883_v15, %v3998_v22 }
 0x148   : > { %v1401_v46 = vsel %vm1216_vm1, %v1400_v25, %v1396_v13  ;;  %1022 = vadd.xlane.f32.xlu1 %v790_v18  ;;  %992 = vadd.xlane.f32.xlu0 %v775_v23  ;;  %v794_v23 = vld [vmem:[%s3901_s30 + $0x360] sm:$0xff] }
 0x149   : > { %v889_v26 = vpop.xlane.xlu1 %888  ;;  %v1406_v29 = vsel %vm1223_vm2, %v1405_v24, %v1401_v46  ;;  %v887_v30 = vpop.xlane.xlu0 %886  ;;  %v779_v24 = vld [vmem:[%s3901_s30 + $0x2e8] sm:$0xff] }
 0x14a   : > { %v1415_v33 = vrot.slane %v889_v26, %v4003_v27  ;;  %v1410_v34 = vrot.slane %v887_v30, %v4006_v28 }
 0x14c   : > { %v1411_v35 = vsel %vm1230_vm3, %v1410_v34, %v1406_v29  ;;  %994 = vadd.xlane.f32.xlu1 %v776_v31  ;;  %1052 = vadd.xlane.f32.xlu0 %v805_v32  ;;  %v780_v32 = vld [vmem:[%s3901_s30 + $0x2f0] sm:$0xff] }
 0x14d   : > { %v893_v37 = vpop.xlane.xlu1 %892  ;;  %v1416_v38 = vsel %vm1237_vm4, %v1415_v33, %v1411_v35  ;;  %v891_v39 = vpop.xlane.xlu0 %890  ;;  %v809_v33 = vld [vmem:[%s3901_s30 + $0x3d8] sm:$0xff] }
 0x14e   : > { %v1425_v43 = vrot.slane %v893_v37, %v4027_v47  ;;  %v1420_v44 = vrot.slane %v891_v39, %v4019_v41 }
 0x150   : > { %v1421_v45 = vsel %vm1244_vm5, %v1420_v44, %v1416_v38  ;;  %1054 = vadd.xlane.f32.xlu1 %v806_v40  ;;  %1024 = vadd.xlane.f32.xlu0 %v791_v42  ;;  %v810_v42 = vld [vmem:[%s3901_s30 + $0x3e0] sm:$0xff] }
 0x151   : > { %v897_v9 = vpop.xlane.xlu1 %896  ;;  %v1426_v48 = vsel %vm1251_vm6, %v1425_v43, %v1421_v45  ;;  %v895_v49 = vpop.xlane.xlu0 %894  ;;  %v795_v43 = vld [vmem:[%s3901_s30 + $0x368] sm:$0xff] }
 0x152   : > { %v1435_v52 = vrot.slane %v897_v9, %v4034_v54  ;;  %v1430_v53 = vrot.slane %v895_v49, %v4037_v55 }
 0x154   : > { %v1431_v56 = vsel %vm1258_vm7, %v1430_v53, %v1426_v48  ;;  %1026 = vadd.xlane.f32.xlu1 %v792_v50  ;;  %996 = vadd.xlane.f32.xlu0 %v777_v51  ;;  %v796_v50 = vld [vmem:[%s3901_s30 + $0x370] sm:$0xff]  ;;  %v781_v51 = vld [vmem:[%s3901_s30 + $0x2f8] sm:$0xff] }
 0x155   : > { %v901_v57 = vpop.xlane.xlu1 %900  ;;  %v1436_v58 = vsel %vm1265_vm8, %v1435_v52, %v1431_v56  ;;  %v899_v59 = vpop.xlane.xlu0 %898 }
 0x156   : > { %v1445_v62 = vrot.slane %v901_v57, %v4052_v7  ;;  %v1440_v63 = vrot.slane %v899_v59, %v4055_v8 }
 0x158   : > { %v1441_v0 = vsel %vm1272_vm9, %v1440_v63, %v1436_v58  ;;  %998 = vadd.xlane.f32.xlu1 %v778_v60  ;;  %1056 = vadd.xlane.f32.xlu0 %v807_v61  ;;  %v797_v60 = vld [vmem:[%s3901_s30 + $0x378] sm:$0xff]  ;;  %v811_v61 = vld [vmem:[%s3901_s30 + $0x3e8] sm:$0xff] }
 0x159   : > { %v905_v1 = vpop.xlane.xlu1 %904  ;;  %v1446_v2 = vsel %vm1279_vm10, %v1445_v62, %v1441_v0  ;;  %v903_v3 = vpop.xlane.xlu0 %902 }
 0x15a   : > { %v1455_v11 = vrot.slane %v905_v1, %v4062_v16  ;;  %v1450_v12 = vrot.slane %v903_v3, %v4065_v17 }
 0x15c   : > { %v1451_v13 = vsel %vm1286_vm11, %v1450_v12, %v1446_v2  ;;  %1058 = vadd.xlane.f32.xlu1 %v808_v4  ;;  %1028 = vadd.xlane.f32.xlu0 %v793_v5  ;;  %v812_v4 = vld [vmem:[%s3901_s30 + $0x3f0] sm:$0xff]  ;;  %v813_v5 = vld [vmem:[%s3901_s30 + $0x3f8] sm:$0xff] }
 0x15d   : > { %v909_v14 = vpop.xlane.xlu1 %908  ;;  %v1456_v15 = vsel %vm1293_vm12, %v1455_v11, %v1451_v13  ;;  %v907_v18 = vpop.xlane.xlu0 %906 }
 0x15e   : > { %v1465_v25 = vrot.slane %v909_v14, %v4078_v6  ;;  %v1460_v46 = vrot.slane %v907_v18, %v4081_v36 }
 0x160   : > { %v1461_v26 = vsel %vm1300_vm13, %v1460_v46, %v1456_v15  ;;  %1030 = vadd.xlane.f32.xlu1 %v794_v23  ;;  %1000 = vadd.xlane.f32.xlu0 %v779_v24 }
 0x161   : > { %v1466_v29 = vsel %vm1307_vm14, %v1465_v25, %v1461_v26  ;;  %v913_v30 = vpop.xlane.xlu1 %912  ;;  %v911_v31 = vpop.xlane.xlu0 %910 }
 0x162   : > { %v4193_v34 = vsel %vm1864_vm15, %v1466_v29, %v4143_v10  ;;  %v1474_v35 = vrot.slane %v913_v30, %v3995_v21  ;;  %v1470_v37 = vrot.slane %v911_v31, %v3989_v19  ;;  %vm1866_vm15 = vcmask 1043459  }
 0x164   : > { %v1475_v38 = vsel %vm1209_vm0, %v1474_v35, %v1470_v37  ;;  %1002 = vadd.xlane.f32.xlu1 %v780_v32  ;;  %1060 = vadd.xlane.f32.xlu0 %v809_v33 }
 0x165   : > { %v917_v39 = vpop.xlane.xlu1 %916  ;;  %v915_v40 = vpop.xlane.xlu0 %914 }
 0x166   : > { %v1484_v44 = vrot.slane %v917_v39, %v3992_v20  ;;  %v1479_v45 = vrot.slane %v915_v40, %v3998_v22 }
 0x168   : > { %v1480_v10 = vsel %vm1216_vm1, %v1479_v45, %v1475_v38  ;;  %1062 = vadd.xlane.f32.xlu1 %v810_v42  ;;  %1032 = vadd.xlane.f32.xlu0 %v795_v43 }
 0x169   : > { %v921_v9 = vpop.xlane.xlu1 %920  ;;  %v1485_v48 = vsel %vm1223_vm2, %v1484_v44, %v1480_v10  ;;  %v919_v49 = vpop.xlane.xlu0 %918 }
 0x16a   : > { %v1494_v52 = vrot.slane %v921_v9, %v4003_v27  ;;  %v1489_v53 = vrot.slane %v919_v49, %v4006_v28 }
 0x16c   : > { %v1490_v56 = vsel %vm1230_vm3, %v1489_v53, %v1485_v48  ;;  %1034 = vadd.xlane.f32.xlu1 %v796_v50  ;;  %1004 = vadd.xlane.f32.xlu0 %v781_v51 }
 0x16d   : > { %v925_v57 = vpop.xlane.xlu1 %924  ;;  %v1495_v58 = vsel %vm1237_vm4, %v1494_v52, %v1490_v56  ;;  %v923_v59 = vpop.xlane.xlu0 %922 }
 0x16e   : > { %v1504_v62 = vrot.slane %v925_v57, %v4027_v47  ;;  %v1499_v63 = vrot.slane %v923_v59, %v4019_v41 }
 0x170   : > { %v1500_v0 = vsel %vm1244_vm5, %v1499_v63, %v1495_v58  ;;  %1036 = vadd.xlane.f32.xlu1 %v797_v60  ;;  %1064 = vadd.xlane.f32.xlu0 %v811_v61 }
 0x171   : > { %v929_v1 = vpop.xlane.xlu1 %928  ;;  %v1505_v2 = vsel %vm1251_vm6, %v1504_v62, %v1500_v0  ;;  %v927_v3 = vpop.xlane.xlu0 %926 }
 0x172   : > { %v1514_v11 = vrot.slane %v929_v1, %v4034_v54  ;;  %v1509_v12 = vrot.slane %v927_v3, %v4037_v55 }
 0x174   : > { %v1510_v13 = vsel %vm1258_vm7, %v1509_v12, %v1505_v2  ;;  %1066 = vadd.xlane.f32.xlu0 %v812_v4  ;;  %1068 = vadd.xlane.f32.xlu1 %v813_v5 }
 0x175   : > { %v933_v14 = vpop.xlane.xlu1 %932  ;;  %v1515_v15 = vsel %vm1265_vm8, %v1514_v11, %v1510_v13  ;;  %v931_v18 = vpop.xlane.xlu0 %930 }
 0x176   : > { %v1524_v23 = vrot.slane %v933_v14, %v4052_v7  ;;  %v1519_v24 = vrot.slane %v931_v18, %v4055_v8 }
 0x178   : > { %v1520_v25 = vsel %vm1272_vm9, %v1519_v24, %v1515_v15 }
 0x179   : > { %v937_v46 = vpop.xlane.xlu1 %936  ;;  %v1525_v26 = vsel %vm1279_vm10, %v1524_v23, %v1520_v25  ;;  %v935_v29 = vpop.xlane.xlu0 %934 }
 0x17a   : > { %v1534_v30 = vrot.slane %v937_v46, %v4062_v16  ;;  %v1529_v31 = vrot.slane %v935_v29, %v4065_v17 }
 0x17c   : > { %v1530_v32 = vsel %vm1286_vm11, %v1529_v31, %v1525_v26 }
 0x17d   : > { %v941_v33 = vpop.xlane.xlu1 %940  ;;  %v1535_v35 = vsel %vm1293_vm12, %v1534_v30, %v1530_v32  ;;  %v939_v37 = vpop.xlane.xlu0 %938 }
 0x17e   : > { %v1544_v38 = vrot.slane %v941_v33, %v4078_v6  ;;  %v1539_v39 = vrot.slane %v939_v37, %v4081_v36 }
 0x180   : > { %v1540_v40 = vsel %vm1300_vm13, %v1539_v39, %v1535_v35 }
 0x181   : > { %v1545_v42 = vsel %vm1307_vm14, %v1544_v38, %v1540_v40  ;;  %v945_v43 = vpop.xlane.xlu1 %944  ;;  %v943_v44 = vpop.xlane.xlu0 %942 }
 0x182   : > { %v1867_v45 = vsel %vm1866_vm15, %v1545_v42, %v4193_v34  ;;  %v1553_v10 = vrot.slane %v945_v43, %v3995_v21  ;;  %v1549_v9 = vrot.slane %v943_v44, %v3989_v19  ;;  %vm1868_vm15 = vcmask 1044484  }
 0x184   : > { %v1554_v48 = vsel %vm1209_vm0, %v1553_v10, %v1549_v9 }
 0x185   : > { %v949_v49 = vpop.xlane.xlu1 %948  ;;  %v947_v50 = vpop.xlane.xlu0 %946 }
 0x186   : > { %v1563_v51 = vrot.slane %v949_v49, %v3992_v20  ;;  %v1558_v52 = vrot.slane %v947_v50, %v3998_v22 }
 0x188   : > { %v1559_v53 = vsel %vm1216_vm1, %v1558_v52, %v1554_v48 }
 0x189   : > { %v953_v56 = vpop.xlane.xlu1 %952  ;;  %v1564_v57 = vsel %vm1223_vm2, %v1563_v51, %v1559_v53  ;;  %v951_v58 = vpop.xlane.xlu0 %950 }
 0x18a   : > { %v1573_v34 = vrot.slane %v953_v56, %v4003_v27  ;;  %v1568_v59 = vrot.slane %v951_v58, %v4006_v28 }
 0x18c   : > { %v1569_v60 = vsel %vm1230_vm3, %v1568_v59, %v1564_v57 }
 0x18d   : > { %v957_v61 = vpop.xlane.xlu1 %956  ;;  %v1574_v62 = vsel %vm1237_vm4, %v1573_v34, %v1569_v60  ;;  %v955_v63 = vpop.xlane.xlu0 %954 }
 0x18e   : > { %v1583_v0 = vrot.slane %v957_v61, %v4027_v47  ;;  %v1578_v1 = vrot.slane %v955_v63, %v4019_v41 }
 0x190   : > { %v1579_v2 = vsel %vm1244_vm5, %v1578_v1, %v1574_v62 }
 0x191   : > { %v961_v3 = vpop.xlane.xlu1 %960  ;;  %v1584_v4 = vsel %vm1251_vm6, %v1583_v0, %v1579_v2  ;;  %v959_v5 = vpop.xlane.xlu0 %958 }
 0x192   : > { %v1593_v11 = vrot.slane %v961_v3, %v4034_v54  ;;  %v1588_v12 = vrot.slane %v959_v5, %v4037_v55 }
 0x194   : > { %v1589_v13 = vsel %vm1258_vm7, %v1588_v12, %v1584_v4 }
 0x195   : > { %v965_v14 = vpop.xlane.xlu1 %964  ;;  %v1594_v15 = vsel %vm1265_vm8, %v1593_v11, %v1589_v13  ;;  %v963_v18 = vpop.xlane.xlu0 %962 }
 0x196   : > { %v1603_v23 = vrot.slane %v965_v14, %v4052_v7  ;;  %v1598_v24 = vrot.slane %v963_v18, %v4055_v8 }
 0x198   : > { %v1599_v25 = vsel %vm1272_vm9, %v1598_v24, %v1594_v15 }
 0x199   : > { %v969_v46 = vpop.xlane.xlu1 %968  ;;  %v1604_v26 = vsel %vm1279_vm10, %v1603_v23, %v1599_v25  ;;  %v967_v29 = vpop.xlane.xlu0 %966 }
 0x19a   : > { %v1613_v30 = vrot.slane %v969_v46, %v4062_v16  ;;  %v1608_v31 = vrot.slane %v967_v29, %v4065_v17 }
 0x19c   : > { %v1609_v32 = vsel %vm1286_vm11, %v1608_v31, %v1604_v26 }
 0x19d   : > { %v973_v33 = vpop.xlane.xlu1 %972  ;;  %v1614_v35 = vsel %vm1293_vm12, %v1613_v30, %v1609_v32  ;;  %v971_v37 = vpop.xlane.xlu0 %970 }
 0x19e   : > { %v1623_v38 = vrot.slane %v973_v33, %v4078_v6  ;;  %v1618_v39 = vrot.slane %v971_v37, %v4081_v36 }
 0x1a0   : > { %v1619_v40 = vsel %vm1300_vm13, %v1618_v39, %v1614_v35 }
 0x1a1   : > { %v1624_v42 = vsel %vm1307_vm14, %v1623_v38, %v1619_v40  ;;  %v977_v43 = vpop.xlane.xlu1 %976  ;;  %v975_v44 = vpop.xlane.xlu0 %974 }
 0x1a2   : > { %v1632_v10 = vrot.slane %v977_v43, %v3995_v21  ;;  %v1628_v9 = vrot.slane %v975_v44, %v3989_v19  ;;  %v4268_v48 = vsel %vm1868_vm15, %v1624_v42, %v1867_v45 }
 0x1a4   : > { %v1633_v49 = vsel %vm1209_vm0, %v1632_v10, %v1628_v9 }
 0x1a5   : > { %v1007_v50 = vpop.xlane.xlu1 %1006  ;;  %v979_v51 = vpop.xlane.xlu0 %978 }
 0x1a6   : > { %v1637_v52 = vrot.slane %v979_v51, %v3998_v22  ;;  %v1707_v58 = vrot.slane %v1007_v50, %v3989_v19 }
 0x1a8   : > { %v1638_v53 = vsel %vm1216_vm1, %v1637_v52, %v1633_v49 }
 0x1a9   : > { %v981_v56 = vpop.xlane.xlu1 %980  ;;  %v1009_v57 = vpop.xlane.xlu0 %1008 }
 0x1aa   : > { %v1642_v34 = vrot.slane %v981_v56, %v3992_v20  ;;  %v1711_v59 = vrot.slane %v1009_v57, %v3995_v21 }
 0x1ac   : > { %v1643_v60 = vsel %vm1223_vm2, %v1642_v34, %v1638_v53  ;;  %v1712_v45 = vsel %vm1209_vm0, %v1711_v59, %v1707_v58 }
 0x1ad   : > { %v1039_v61 = vpop.xlane.xlu1 %1038  ;;  %v1011_v62 = vpop.xlane.xlu0 %1010 }
 0x1ae   : > { %v1716_v63 = vrot.slane %v1011_v62, %v3998_v22  ;;  %v1786_v49 = vrot.slane %v1039_v61, %v3989_v19 }
 0x1b0   : > { %v1717_v0 = vsel %vm1216_vm1, %v1716_v63, %v1712_v45 }
 0x1b1   : > { %v983_v1 = vpop.xlane.xlu1 %982  ;;  %v1041_v2 = vpop.xlane.xlu0 %1040 }
 0x1b2   : > { %v1790_v44 = vrot.slane %v1041_v2, %v3995_v21  ;;  %v1647_v10 = vrot.slane %v983_v1, %v4006_v28 }
 0x1b4   : > { %v1791_v57 = vsel %vm1209_vm0, %v1790_v44, %v1786_v49  ;;  %v1648_v34 = vsel %vm1230_vm3, %v1647_v10, %v1643_v60  ;;  %vm1870_vm0 = vcmask 1045509  }
 0x1b5   : > { %v1043_v3 = vpop.xlane.xlu1 %1042  ;;  %v1013_v4 = vpop.xlane.xlu0 %1012 }
 0x1b6   : > { %v1795_v9 = vrot.slane %v1043_v3, %v3998_v22  ;;  %v1721_v50 = vrot.slane %v1013_v4, %v3992_v20 }
 0x1b8   : > { %v1796_v22 = vsel %vm1216_vm1, %v1795_v9, %v1791_v57  ;;  %v1722_v45 = vsel %vm1223_vm2, %v1721_v50, %v1717_v0  ;;  %vm1872_vm1 = vcmask 1046534  }
 0x1b9   : > { %v1015_v5 = vpop.xlane.xlu1 %1014  ;;  %v985_v11 = vpop.xlane.xlu0 %984 }
 0x1ba   : > { %v1726_v53 = vrot.slane %v1015_v5, %v4006_v28  ;;  %v1652_v56 = vrot.slane %v985_v11, %v4003_v27 }
 0x1bc   : > { %v1653_v60 = vsel %vm1237_vm4, %v1652_v56, %v1648_v34 }
 0x1bd   : > { %v987_v12 = vpop.xlane.xlu1 %986  ;;  %v1045_v13 = vpop.xlane.xlu0 %1044 }
 0x1be   : > { %v1657_v58 = vrot.slane %v987_v12, %v4019_v41  ;;  %v1800_v21 = vrot.slane %v1045_v13, %v3992_v20  ;;  %v1727_v20 = vsel %vm1230_vm3, %v1726_v53, %v1722_v45 }
 0x1c0   : > { %v1658_v0 = vsel %vm1244_vm5, %v1657_v58, %v1653_v60 }
 0x1c1   : > { %v1047_v14 = vpop.xlane.xlu1 %1046  ;;  %v1017_v15 = vpop.xlane.xlu0 %1016 }
 0x1c2   : > { %v1731_v19 = vrot.slane %v1017_v15, %v4003_v27  ;;  %v1805_v61 = vrot.slane %v1047_v14, %v4006_v28  ;;  %v1801_v28 = vsel %vm1223_vm2, %v1800_v21, %v1796_v22  ;;  %vm1874_vm2 = vcmask 1047559  }
 0x1c4   : > { %v1732_v12 = vsel %vm1237_vm4, %v1731_v19, %v1727_v20  ;;  %v1806_v15 = vsel %vm1230_vm3, %v1805_v61, %v1801_v28 }
 0x1c5   : > { %v1019_v18 = vpop.xlane.xlu1 %1018  ;;  %v989_v23 = vpop.xlane.xlu0 %988 }
 0x1c6   : > { %v1662_v59 = vrot.slane %v989_v23, %v4027_v47  ;;  %v1736_v62 = vrot.slane %v1019_v18, %v4019_v41 }
 0x1c8   : > { %v1663_v13 = vsel %vm1251_vm6, %v1662_v59, %v1658_v0  ;;  %v1737_v18 = vsel %vm1244_vm5, %v1736_v62, %v1732_v12 }
 0x1c9   : > { %v991_v24 = vpop.xlane.xlu1 %990  ;;  %v1049_v25 = vpop.xlane.xlu0 %1048 }
 0x1ca   : > { %v1667_v63 = vrot.slane %v991_v24, %v4037_v55  ;;  %v1810_v3 = vrot.slane %v1049_v25, %v4003_v27 }
 0x1cc   : > { %v1668_v23 = vsel %vm1258_vm7, %v1667_v63, %v1663_v13 }
 0x1cd   : > { %v4280_v46 = vpop.xlane.xlu1 %1050  ;;  %v1021_v26 = vpop.xlane.xlu0 %1020 }
 0x1ce   : > { %v1741_v5 = vrot.slane %v1021_v26, %v4027_v47  ;;  %v1815_v49 = vrot.slane %v4280_v46, %v4019_v41 }
 0x1d1   : > { %v4282_v29 = vpop.xlane.xlu1 %1022  ;;  %v993_v30 = vpop.xlane.xlu0 %992 }
 0x1d2   : > { %v1672_v4 = vrot.slane %v993_v30, %v4034_v54  ;;  %v1746_v14 = vrot.slane %v4282_v29, %v4037_v55  ;;  %v1811_v30 = vsel %vm1237_vm4, %v1810_v3, %v1806_v15 }
 0x1d5   : > { %v995_v31 = vpop.xlane.xlu1 %994  ;;  %v4284_v32 = vpop.xlane.xlu0 %1052 }
 0x1d6   : > { %v1677_v11 = vrot.slane %v995_v31, %v4055_v8  ;;  %v1673_v31 = vsel %vm1265_vm8, %v1672_v4, %v1668_v23 }
 0x1d8   : > { %v1678_v10 = vsel %vm1272_vm9, %v1677_v11, %v1673_v31 }
 0x1d9   : > { %v4286_v33 = vpop.xlane.xlu1 %1054  ;;  %v4288_v35 = vpop.xlane.xlu0 %1024 }
 0x1da   : > { %v1751_v44 = vrot.slane %v4288_v35, %v4034_v54  ;;  %v1825_v56 = vrot.slane %v4286_v33, %v4037_v55 }
 0x1dd   : > { %v4290_v37 = vpop.xlane.xlu1 %1026  ;;  %v997_v38 = vpop.xlane.xlu0 %996 }
 0x1de   : > { %v1682_v27 = vrot.slane %v997_v38, %v4052_v7  ;;  %v1742_v38 = vsel %vm1251_vm6, %v1741_v5, %v1737_v18  ;;  %v1756_v9 = vrot.slane %v4290_v37, %v4055_v8 }
 0x1df   : > { %v1747_v50 = vsel %vm1258_vm7, %v1746_v14, %v1742_v38  ;;  %v685_v14 = vld [vmem:[#allocation2] sm:$0xff] }
 0x1e0   : > { %v1683_v53 = vsel %vm1279_vm10, %v1682_v27, %v1678_v10  ;;  %v1752_v46 = vsel %vm1265_vm8, %v1751_v44, %v1747_v50 }
 0x1e1   : > { %v999_v39 = vpop.xlane.xlu1 %998  ;;  %v4292_v40 = vpop.xlane.xlu0 %1056 }
 0x1e2   : > { %v1687_v24 = vrot.slane %v999_v39, %v4065_v17  ;;  %v1830_v55 = vrot.slane %v4292_v40, %v4034_v54 }
 0x1e4   : > { %v1688_v37 = vsel %vm1286_vm11, %v1687_v24, %v1683_v53 }
 0x1e5   : > { %v4294_v42 = vpop.xlane.xlu1 %1058  ;;  %v4296_v43 = vpop.xlane.xlu0 %1028 }
 0x1e6   : > { %v1761_v35 = vrot.slane %v4296_v43, %v4052_v7  ;;  %v1835_v22 = vrot.slane %v4294_v42, %v4055_v8 }
 0x1e9   : > { %v4303_v51 = vpop.xlane.xlu1 %1030  ;;  %v1001_v52 = vpop.xlane.xlu0 %1000 }
 0x1ea   : > { %v1692_v29 = vrot.slane %v1001_v52, %v4062_v16  ;;  %v1820_v52 = vrot.slane %v4284_v32, %v4027_v47  ;;  %v1766_v57 = vrot.slane %v4303_v51, %v4065_v17  ;;  %v1757_v47 = vsel %vm1272_vm9, %v1756_v9, %v1752_v46 }
 0x1eb   : > { %v1816_v51 = vsel %vm1244_vm5, %v1815_v49, %v1811_v30  ;;  %v1762_v19 = vsel %vm1279_vm10, %v1761_v35, %v1757_v47 }
 0x1ec   : > { %v1693_v21 = vsel %vm1293_vm12, %v1692_v29, %v1688_v37  ;;  %v1821_v45 = vsel %vm1251_vm6, %v1820_v52, %v1816_v51  ;;  %v1767_v61 = vsel %vm1286_vm11, %v1766_v57, %v1762_v19 }
 0x1ed   : > { %v1003_v1 = vpop.xlane.xlu1 %1002  ;;  %v4318_v2 = vpop.xlane.xlu0 %1060 }
 0x1ee   : > { %v1697_v39 = vrot.slane %v1003_v1, %v4081_v36  ;;  %v1840_v54 = vrot.slane %v4318_v2, %v4052_v7  ;;  %v1826_v1 = vsel %vm1258_vm7, %v1825_v56, %v1821_v45 }
 0x1ef   : > { %v1831_v60 = vsel %vm1265_vm8, %v1830_v55, %v1826_v1 }
 0x1f0   : > { %v1698_v32 = vsel %vm1300_vm13, %v1697_v39, %v1693_v21  ;;  %v1836_v7 = vsel %vm1272_vm9, %v1835_v22, %v1831_v60 }
 0x1f1   : > { %v1063_v25 = vpop.xlane.xlu1 %1062  ;;  %v1033_v26 = vpop.xlane.xlu0 %1032  ;;  %v1841_v2 = vsel %vm1279_vm10, %v1840_v54, %v1836_v7 }
 0x1f2   : > { %v1771_v34 = vrot.slane %v1033_v26, %v4062_v16  ;;  %v1845_v8 = vrot.slane %v1063_v25, %v4065_v17 }
 0x1f4   : > { %v1772_v42 = vsel %vm1293_vm12, %v1771_v34, %v1767_v61  ;;  %v1846_v5 = vsel %vm1286_vm11, %v1845_v8, %v1841_v2 }
 0x1f5   : > { %v1035_v58 = vpop.xlane.xlu1 %1034  ;;  %v1005_v41 = vpop.xlane.xlu0 %1004 }
 0x1f6   : > { %v1702_v43 = vrot.slane %v1005_v41, %v4078_v6  ;;  %v1776_v33 = vrot.slane %v1035_v58, %v4081_v36 }
 0x1f8   : > { %v1703_v59 = vsel %vm1307_vm14, %v1702_v43, %v1698_v32  ;;  %v1777_v3 = vsel %vm1300_vm13, %v1776_v33, %v1772_v42 }
 0x1f9   : > { %v1871_v40 = vsel %vm1870_vm0, %v1703_v59, %v4268_v48  ;;  %v1037_v62 = vpop.xlane.xlu1 %1036  ;;  %v1065_v63 = vpop.xlane.xlu0 %1064 }
 0x1fa   : > { %v1781_v20 = vrot.slane %v1037_v62, %v4078_v6  ;;  %v1850_v4 = vrot.slane %v1065_v63, %v4062_v16 }
 0x1fc   : > { %v1782_v48 = vsel %vm1307_vm14, %v1781_v20, %v1777_v3  ;;  %v1851_v13 = vsel %vm1293_vm12, %v1850_v4, %v1846_v5 }
 0x1fd   : > { %v1873_v0 = vsel %vm1872_vm1, %v1782_v48, %v1871_v40  ;;  %v1067_v28 = vpop.xlane.xlu0 %1066  ;;  %v1069_v17 = vpop.xlane.xlu1 %1068 }
 0x1fe   : > { %v1855_v11 = vrot.slane %v1067_v28, %v4081_v36  ;;  %v1860_v12 = vrot.slane %v1069_v17, %v4078_v6 }
 0x200   : > { %v1856_v16 = vsel %vm1300_vm13, %v1855_v11, %v1851_v13 }
 0x201   : > { %v1861_v27 = vsel %vm1307_vm14, %v1860_v12, %v1856_v16 }
 0x202   : > { %v1875_v15 = vsel %vm1874_vm2, %v1861_v27, %v1873_v0 }
 0x203   : > { %v1877_v18 = vadd.f32 %v1875_v15, %v685_v14 }
 0x205   : > { %1878 = vst [vmem:[#allocation2] sm:$0xff] %v1877_v18 }
 0x206 PF: > { %p3317_p5 = scmp.ne.s32.totalorder %s3504_s11, 1 }
 0x207   : > { %s3318_s9 = sshll.u32 (!%p3317_p5), %s3504_s11, 7 }
 0x208   : > { %1882 = sbr.rel (%p3317_p5) target bundleno = 933 (0x3a5), region = 74 }
 0x20d   : > { %v1883_v23 = vlaneseq  ;;  %v1886_v6 = vstv %s3318_s9  ;;  %v1891_v25 = vld [vmem:[%s3901_s30 + $0x10] sm:$0xff]  ;;  %v1889_v26 = vld [vmem:[%s3901_s30] sm:$0xff]  ;;  %v1892_v30 = vld [vmem:[%s3901_s30 + $0x18] sm:$0xff]  ;;  %vm2539_vm4 = vcmask 130112   ;;  %vm2546_vm5 = vcmask 195712  }
 0x20e   : > { %v1890_v31 = vld [vmem:[%s3901_s30 + $0x8] sm:$0xff]  ;;  %v1893_v39 = vld [vmem:[%s3901_s30 + $0x20] sm:$0xff]  ;;  %v1896_v53 = vld [vmem:[%s3901_s30 + $0x38] sm:$0xff]  ;;  %vm2553_vm6 = vcmask 261312   ;;  %vm2560_vm7 = vcmask 326912   ;;  %vm2567_vm8 = vcmask 392512  }
 0x20f   : > { %v4399_v36 = vand.u32 127, %v1883_v23  ;;  %v1894_v9 = vld [vmem:[%s3901_s30 + $0x28] sm:$0xff]  ;;  %v1895_v35 = vld [vmem:[%s3901_s30 + $0x30] sm:$0xff]  ;;  %v1897_v57 = vld [vmem:[%s3901_s30 + $0x40] sm:$0xff]  ;;  %v2531_v32 = vshrl.u32 %v1883_v23, 7  ;;  %vm2574_vm9 = vcmask 458112  }
 0x210   : > { %v1898_v37 = vld [vmem:[%s3901_s30 + $0x48] sm:$0xff]  ;;  %v1900_v46 = vld [vmem:[%s3901_s30 + $0x58] sm:$0xff]  ;;  %v1899_v21 = vld [vmem:[%s3901_s30 + $0x50] sm:$0xff]  ;;  %vm2581_vm10 = vcmask 523712   ;;  %vm2588_vm11 = vcmask 589312   ;;  %vm2595_vm12 = vcmask 654912  }
 0x211   : > { %v4402_v24 = vadd.s32 %v1886_v6, %v4399_v36  ;;  %v1902_v47 = vld [vmem:[%s3901_s30 + $0x68] sm:$0xff]  ;;  %v1901_v55 = vld [vmem:[%s3901_s30 + $0x60] sm:$0xff]  ;;  %v2541_v33 = vadd.s32 4294967280, %v4399_v36  ;;  %v2548_v51 = vadd.s32 4294967272, %v4399_v36  ;;  %v4446_v22 = vsub.s32 %v4399_v36, %v2531_v32  ;;  %v1904_v40 = vld [vmem:[%s3901_s30 + $0x78] sm:$0xff] }
 0x212   : > { %v2534_v19 = vadd.s32 4294967288, %v4399_v36  ;;  %v1903_v62 = vld [vmem:[%s3901_s30 + $0x70] sm:$0xff]  ;;  %v2562_v1 = vadd.s32 4294967256, %v4399_v36  ;;  %v2555_v8 = vadd.s32 4294967264, %v4399_v36  ;;  %v2576_v20 = vadd.s32 4294967240, %v4399_v36  ;;  %v1906_v48 = vld [vmem:[%s3901_s30 + $0x88] sm:$0xff] }
 0x213   : > { %vm1888_vm3 = vcmp.lt.s32.totalorder %v4402_v24, 200  ;;  %v4453_v61 = vsub.s32 %v2541_v33, %v2531_v32  ;;  %v4455_v54 = vsub.s32 %v2548_v51, %v2531_v32  ;;  %v2569_v60 = vadd.s32 4294967248, %v4399_v36  ;;  %v1905_v2 = vld [vmem:[%s3901_s30 + $0x80] sm:$0xff]  ;;  %v1908_v15 = vld [vmem:[%s3901_s30 + $0x98] sm:$0xff]  ;;  %v1907_v18 = vld [vmem:[%s3901_s30 + $0x90] sm:$0xff] }
 0x214   : > { %v2019_v44 = vsel %vm1888_vm3, %v1891_v25, 0.0  ;;  %v2017_v29 = vsel %vm1888_vm3, %v1889_v26, 0.0  ;;  %v2020_v38 = vsel %vm1888_vm3, %v1892_v30, 0.0  ;;  %v2018_v10 = vsel %vm1888_vm3, %v1890_v31, 0.0 }
 0x215   : > { %2150 = vadd.xlane.f32.xlu1 %v2019_v44  ;;  %2146 = vadd.xlane.f32.xlu0 %v2017_v29  ;;  %v2022_v49 = vsel %vm1888_vm3, %v1894_v9, 0.0  ;;  %v2021_v50 = vsel %vm1888_vm3, %v1893_v39, 0.0  ;;  %v2024_v52 = vsel %vm1888_vm3, %v1896_v53, 0.0  ;;  %v2023_v56 = vsel %vm1888_vm3, %v1895_v35, 0.0 }
 0x216   : > { %v2026_v58 = vsel %vm1888_vm3, %v1898_v37, 0.0  ;;  %v2025_v41 = vsel %vm1888_vm3, %v1897_v57, 0.0  ;;  %v2028_v34 = vsel %vm1888_vm3, %v1900_v46, 0.0  ;;  %v2027_v43 = vsel %vm1888_vm3, %v1899_v21, 0.0  ;;  %v1914_v57 = vld [vmem:[%s3901_s30 + $0xc8] sm:$0xff]  ;;  %v1916_v21 = vld [vmem:[%s3901_s30 + $0xd8] sm:$0xff] }
 0x217   : > { %v2030_v59 = vsel %vm1888_vm3, %v1902_v47, 0.0  ;;  %v2029_v45 = vsel %vm1888_vm3, %v1901_v55, 0.0  ;;  %v4459_v63 = vsub.s32 %v2534_v19, %v2531_v32  ;;  %v4463_v42 = vsub.s32 %v2562_v1, %v2531_v32  ;;  %v1918_v55 = vld [vmem:[%s3901_s30 + $0xe8] sm:$0xff]  ;;  %v1920_v19 = vld [vmem:[%s3901_s30 + $0xf8] sm:$0xff]  ;;  %v1921_v1 = vld [vmem:[%s3901_s30 + $0x100] sm:$0xff] }
 0x218   : > { %v2032_v3 = vsel %vm1888_vm3, %v1904_v40, 0.0  ;;  %v2031_v4 = vsel %vm1888_vm3, %v1903_v62, 0.0  ;;  %v4471_v7 = vsub.s32 %v2555_v8, %v2531_v32  ;;  %v4475_v0 = vsub.s32 %v2576_v20, %v2531_v32  ;;  %v1922_v62 = vld [vmem:[%s3901_s30 + $0x108] sm:$0xff] }
 0x219   : > { %2152 = vadd.xlane.f32.xlu1 %v2020_v38  ;;  %2148 = vadd.xlane.f32.xlu0 %v2018_v10  ;;  %v4477_v28 = vsub.s32 %v2569_v60, %v2531_v32  ;;  %v2590_v17 = vadd.s32 4294967224, %v4399_v36  ;;  %v2583_v5 = vadd.s32 4294967232, %v4399_v36  ;;  %v2604_v12 = vadd.s32 4294967208, %v4399_v36  ;;  %v1910_v38 = vld [vmem:[%s3901_s30 + $0xa8] sm:$0xff]  ;;  %v1909_v10 = vld [vmem:[%s3901_s30 + $0xa0] sm:$0xff]  ;;  %v1924_v60 = vld [vmem:[%s3901_s30 + $0x118] sm:$0xff] }
 0x21a   : > { %v2597_v13 = vadd.s32 4294967216, %v4399_v36  ;;  %v2034_v16 = vsel %vm1888_vm3, %v1906_v48, 0.0  ;;  %v2033_v14 = vsel %vm1888_vm3, %v1905_v2, 0.0  ;;  %v2611_v25 = vadd.s32 4294967200, %v4399_v36  ;;  %v1926_v2 = vld [vmem:[%s3901_s30 + $0x128] sm:$0xff] }
 0x21b   : > { %v4481_v11 = vsub.s32 %v2590_v17, %v2531_v32  ;;  %v4489_v27 = vsub.s32 %v2583_v5, %v2531_v32  ;;  %v4493_v23 = vsub.s32 %v2604_v12, %v2531_v32  ;;  %v2618_v26 = vadd.s32 4294967192, %v4399_v36  ;;  %v1925_v17 = vld [vmem:[%s3901_s30 + $0x120] sm:$0xff] }
 0x21c   : > { %v4495_v6 = vsub.s32 %v2597_v13, %v2531_v32  ;;  %v4499_v30 = vsub.s32 %v2611_v25, %v2531_v32  ;;  %v2036_v31 = vsel %vm1888_vm3, %v1908_v15, 0.0  ;;  %v2035_v44 = vsel %vm1888_vm3, %v1907_v18, 0.0  ;;  %v1928_v13 = vld [vmem:[%s3901_s30 + $0x138] sm:$0xff]  ;;  %v1930_v18 = vld [vmem:[%s3901_s30 + $0x148] sm:$0xff]  ;;  %v1929_v25 = vld [vmem:[%s3901_s30 + $0x140] sm:$0xff] }
 0x21d   : > { %2156 = vadd.xlane.f32.xlu1 %v2022_v49  ;;  %2154 = vadd.xlane.f32.xlu0 %v2021_v50  ;;  %v4505_v29 = vsub.s32 %v2618_v26, %v2531_v32  ;;  %v2625_v9 = vadd.s32 4294967184, %v4399_v36  ;;  %v2632_v39 = vadd.s32 4294967176, %v4399_v36  ;;  %v2038_v50 = vsel %vm1888_vm3, %v1910_v38, 0.0  ;;  %v1931_v38 = vld [vmem:[%s3901_s30 + $0x150] sm:$0xff] }
 0x21e   : > { %v2037_v53 = vsel %vm1888_vm3, %v1909_v10, 0.0  ;;  %v2046_v33 = vsel %vm1888_vm3, %v1918_v55, 0.0  ;;  %v2050_v8 = vsel %vm1888_vm3, %v1922_v62, 0.0  ;;  %v2049_v20 = vsel %vm1888_vm3, %v1921_v1, 0.0  ;;  %v1946_v1 = vld [vmem:[%s3901_s30 + $0x1c8] sm:$0xff] }
 0x21f   : > { %v4511_v49 = vsub.s32 %v2625_v9, %v2531_v32  ;;  %v4517_v35 = vsub.s32 %v2632_v39, %v2531_v32  ;;  %v1917_v32 = vld [vmem:[%s3901_s30 + $0xe0] sm:$0xff]  ;;  %v2054_v5 = vsel %vm1888_vm3, %v1926_v2, 0.0  ;;  %v2053_v12 = vsel %vm1888_vm3, %v1925_v17, 0.0  ;;  %v1934_v39 = vld [vmem:[%s3901_s30 + $0x168] sm:$0xff] }
 0x220   : > { %v2045_v51 = vsel %vm1888_vm3, %v1917_v32, 0.0  ;;  %v2058_v26 = vsel %vm1888_vm3, %v1930_v18, 0.0  ;;  %v2059_v9 = vsel %vm1888_vm3, %v1931_v38, 0.0  ;;  %v1942_v32 = vld [vmem:[%s3901_s30 + $0x1a8] sm:$0xff]  ;;  %v1956_v38 = vld [vmem:[%s3901_s30 + $0x218] sm:$0xff]  ;;  %vm2602_vm13 = vcmask 720512  }
 0x221   : > { %2160 = vadd.xlane.f32.xlu1 %v2024_v52  ;;  %2158 = vadd.xlane.f32.xlu0 %v2023_v56  ;;  %v1912_v52 = vld [vmem:[%s3901_s30 + $0xb8] sm:$0xff]  ;;  %v1911_v56 = vld [vmem:[%s3901_s30 + $0xb0] sm:$0xff]  ;;  %v1950_v17 = vld [vmem:[%s3901_s30 + $0x1e8] sm:$0xff]  ;;  %vm2609_vm14 = vcmask 786112   ;;  %vm5158_vm15 = vcmask 851712   ;;  %vm2623_vm0 = vcmask 917312  }
 0x222   : > { %v2040_v36 = vsel %vm1888_vm3, %v1912_v52, 0.0  ;;  %v2039_v37 = vsel %vm1888_vm3, %v1911_v56, 0.0  ;;  %v1936_v56 = vld [vmem:[%s3901_s30 + $0x178] sm:$0xff]  ;;  %vm2630_vm1 = vcmask 982912   ;;  %vm2637_vm2 = vcmask 1048512  }
 0x225   : > { %2164 = vadd.xlane.f32.xlu1 %v2026_v58  ;;  %2162 = vadd.xlane.f32.xlu0 %v2025_v41  ;;  %v1913_v58 = vld [vmem:[%s3901_s30 + $0xc0] sm:$0xff]  ;;  %v2042_v41 = vsel %vm1888_vm3, %v1914_v57, 0.0 }
 0x226   : > { %v2041_v46 = vsel %vm1888_vm3, %v1913_v58, 0.0  ;;  %v1938_v58 = vld [vmem:[%s3901_s30 + $0x188] sm:$0xff] }
 0x229   : > { %2168 = vadd.xlane.f32.xlu1 %v2028_v34  ;;  %2166 = vadd.xlane.f32.xlu0 %v2027_v43  ;;  %v1915_v34 = vld [vmem:[%s3901_s30 + $0xd0] sm:$0xff]  ;;  %v2044_v43 = vsel %vm1888_vm3, %v1916_v21, 0.0 }
 0x22a   : > { %v2043_v47 = vsel %vm1888_vm3, %v1915_v34, 0.0  ;;  %v1940_v34 = vld [vmem:[%s3901_s30 + $0x198] sm:$0xff] }
 0x22d   : > { %2172 = vadd.xlane.f32.xlu1 %v2030_v59  ;;  %2170 = vadd.xlane.f32.xlu0 %v2029_v45  ;;  %v1919_v59 = vld [vmem:[%s3901_s30 + $0xf0] sm:$0xff]  ;;  %v2048_v45 = vsel %vm1888_vm3, %v1920_v19, 0.0 }
 0x22e   : > { %v2047_v40 = vsel %vm1888_vm3, %v1919_v59, 0.0  ;;  %v1944_v59 = vld [vmem:[%s3901_s30 + $0x1b8] sm:$0xff] }
 0x231   : > { %2176 = vadd.xlane.f32.xlu1 %v2032_v3  ;;  %2174 = vadd.xlane.f32.xlu0 %v2031_v4  ;;  %v1923_v3 = vld [vmem:[%s3901_s30 + $0x110] sm:$0xff]  ;;  %v2052_v4 = vsel %vm1888_vm3, %v1924_v60, 0.0 }
 0x232   : > { %v2051_v48 = vsel %vm1888_vm3, %v1923_v3, 0.0  ;;  %v1948_v3 = vld [vmem:[%s3901_s30 + $0x1d8] sm:$0xff] }
 0x235   : > { %2180 = vadd.xlane.f32.xlu1 %v2034_v16  ;;  %2178 = vadd.xlane.f32.xlu0 %v2033_v14  ;;  %v1927_v16 = vld [vmem:[%s3901_s30 + $0x130] sm:$0xff]  ;;  %v2056_v14 = vsel %vm1888_vm3, %v1928_v13, 0.0 }
 0x236   : > { %v2055_v15 = vsel %vm1888_vm3, %v1927_v16, 0.0  ;;  %v1952_v16 = vld [vmem:[%s3901_s30 + $0x1f8] sm:$0xff] }
 0x239   : > { %2184 = vadd.xlane.f32.xlu1 %v2036_v31  ;;  %2182 = vadd.xlane.f32.xlu0 %v2035_v44  ;;  %v2057_v31 = vsel %vm1888_vm3, %v1929_v25, 0.0  ;;  %v1932_v44 = vld [vmem:[%s3901_s30 + $0x158] sm:$0xff]  ;;  %v1954_v25 = vld [vmem:[%s3901_s30 + $0x208] sm:$0xff] }
 0x23a   : > { %v2060_v10 = vsel %vm1888_vm3, %v1932_v44, 0.0 }
 0x23d   : > { %2188 = vadd.xlane.f32.xlu1 %v2038_v50  ;;  %2186 = vadd.xlane.f32.xlu0 %v2037_v53  ;;  %v1933_v50 = vld [vmem:[%s3901_s30 + $0x160] sm:$0xff]  ;;  %v2062_v53 = vsel %vm1888_vm3, %v1934_v39, 0.0 }
 0x23e   : > { %v2061_v52 = vsel %vm1888_vm3, %v1933_v50, 0.0  ;;  %v1958_v50 = vld [vmem:[%s3901_s30 + $0x228] sm:$0xff] }
 0x241   : > { %2192 = vadd.xlane.f32.xlu1 %v2040_v36  ;;  %2190 = vadd.xlane.f32.xlu0 %v2039_v37  ;;  %v1935_v36 = vld [vmem:[%s3901_s30 + $0x170] sm:$0xff]  ;;  %v2064_v37 = vsel %vm1888_vm3, %v1936_v56, 0.0 }
 0x242   : > { %v2063_v57 = vsel %vm1888_vm3, %v1935_v36, 0.0  ;;  %v1960_v36 = vld [vmem:[%s3901_s30 + $0x238] sm:$0xff] }
 0x245   : > { %2196 = vadd.xlane.f32.xlu1 %v2042_v41  ;;  %2194 = vadd.xlane.f32.xlu0 %v2041_v46  ;;  %v1937_v41 = vld [vmem:[%s3901_s30 + $0x180] sm:$0xff]  ;;  %v2066_v46 = vsel %vm1888_vm3, %v1938_v58, 0.0 }
 0x246   : > { %v2065_v21 = vsel %vm1888_vm3, %v1937_v41, 0.0  ;;  %v2088_v41 = vsel %vm1888_vm3, %v1960_v36, 0.0  ;;  %v1986_v36 = vld [vmem:[%s3901_s30 + $0x308] sm:$0xff] }
 0x249   : > { %2200 = vadd.xlane.f32.xlu1 %v2044_v43  ;;  %2198 = vadd.xlane.f32.xlu0 %v2043_v47  ;;  %v1939_v43 = vld [vmem:[%s3901_s30 + $0x190] sm:$0xff]  ;;  %v2068_v47 = vsel %vm1888_vm3, %v1940_v34, 0.0 }
 0x24a   : > { %v2067_v55 = vsel %vm1888_vm3, %v1939_v43, 0.0  ;;  %v1962_v43 = vld [vmem:[%s3901_s30 + $0x248] sm:$0xff] }
 0x24d   : > { %2204 = vadd.xlane.f32.xlu1 %v2046_v33  ;;  %2202 = vadd.xlane.f32.xlu0 %v2045_v51  ;;  %v1941_v33 = vld [vmem:[%s3901_s30 + $0x1a0] sm:$0xff]  ;;  %v2070_v51 = vsel %vm1888_vm3, %v1942_v32, 0.0 }
 0x24e   : > { %v2069_v19 = vsel %vm1888_vm3, %v1941_v33, 0.0  ;;  %v2090_v33 = vsel %vm1888_vm3, %v1962_v43, 0.0 }
 0x251   : > { %2208 = vadd.xlane.f32.xlu1 %v2048_v45  ;;  %2206 = vadd.xlane.f32.xlu0 %v2047_v40  ;;  %v1943_v45 = vld [vmem:[%s3901_s30 + $0x1b0] sm:$0xff]  ;;  %v2072_v40 = vsel %vm1888_vm3, %v1944_v59, 0.0 }
 0x252   : > { %v2071_v62 = vsel %vm1888_vm3, %v1943_v45, 0.0  ;;  %v1964_v45 = vld [vmem:[%s3901_s30 + $0x258] sm:$0xff] }
 0x255   : > { %2212 = vadd.xlane.f32.xlu1 %v2050_v8  ;;  %2210 = vadd.xlane.f32.xlu0 %v2049_v20  ;;  %v1945_v8 = vld [vmem:[%s3901_s30 + $0x1c0] sm:$0xff]  ;;  %v2074_v20 = vsel %vm1888_vm3, %v1946_v1, 0.0 }
 0x256   : > { %v2073_v60 = vsel %vm1888_vm3, %v1945_v8, 0.0 }
 0x259   : > { %2216 = vadd.xlane.f32.xlu1 %v2052_v4  ;;  %2214 = vadd.xlane.f32.xlu0 %v2051_v48  ;;  %v1947_v4 = vld [vmem:[%s3901_s30 + $0x1d0] sm:$0xff]  ;;  %v2076_v48 = vsel %vm1888_vm3, %v1948_v3, 0.0 }
 0x25a   : > { %v2075_v2 = vsel %vm1888_vm3, %v1947_v4, 0.0 }
 0x25d   : > { %2220 = vadd.xlane.f32.xlu1 %v2054_v5  ;;  %2218 = vadd.xlane.f32.xlu0 %v2053_v12  ;;  %v1949_v5 = vld [vmem:[%s3901_s30 + $0x1e0] sm:$0xff]  ;;  %v2078_v12 = vsel %vm1888_vm3, %v1950_v17, 0.0 }
 0x25e   : > { %v2077_v13 = vsel %vm1888_vm3, %v1949_v5, 0.0  ;;  %v1969_v17 = vld [vmem:[%s3901_s30 + $0x280] sm:$0xff] }
 0x25f   : > { %v1965_v5 = vld [vmem:[%s3901_s30 + $0x260] sm:$0xff] }
 0x261   : > { %2224 = vadd.xlane.f32.xlu1 %v2056_v14  ;;  %2222 = vadd.xlane.f32.xlu0 %v2055_v15  ;;  %v1951_v14 = vld [vmem:[%s3901_s30 + $0x1f0] sm:$0xff]  ;;  %v2080_v15 = vsel %vm1888_vm3, %v1952_v16, 0.0 }
 0x262   : > { %v2079_v18 = vsel %vm1888_vm3, %v1951_v14, 0.0 }
 0x265   : > { %2228 = vadd.xlane.f32.xlu1 %v2058_v26  ;;  %2226 = vadd.xlane.f32.xlu0 %v2057_v31  ;;  %v1953_v26 = vld [vmem:[%s3901_s30 + $0x200] sm:$0xff]  ;;  %v2082_v31 = vsel %vm1888_vm3, %v1954_v25, 0.0 }
 0x266   : > { %v2081_v44 = vsel %vm1888_vm3, %v1953_v26, 0.0 }
 0x269   : > { %2232 = vadd.xlane.f32.xlu1 %v2060_v10  ;;  %2230 = vadd.xlane.f32.xlu0 %v2059_v9  ;;  %v1955_v10 = vld [vmem:[%s3901_s30 + $0x210] sm:$0xff]  ;;  %v2084_v9 = vsel %vm1888_vm3, %v1956_v38, 0.0 }
 0x26a   : > { %v2083_v39 = vsel %vm1888_vm3, %v1955_v10, 0.0 }
 0x26d   : > { %2236 = vadd.xlane.f32.xlu1 %v2062_v53  ;;  %2234 = vadd.xlane.f32.xlu0 %v2061_v52  ;;  %v1957_v53 = vld [vmem:[%s3901_s30 + $0x220] sm:$0xff]  ;;  %v2086_v52 = vsel %vm1888_vm3, %v1958_v50, 0.0 }
 0x26e   : > { %v2085_v56 = vsel %vm1888_vm3, %v1957_v53, 0.0 }
 0x271   : > { %2240 = vadd.xlane.f32.xlu1 %v2064_v37  ;;  %2238 = vadd.xlane.f32.xlu0 %v2063_v57  ;;  %v1959_v37 = vld [vmem:[%s3901_s30 + $0x230] sm:$0xff] }
 0x275   : > { %2244 = vadd.xlane.f32.xlu1 %v2066_v46  ;;  %2242 = vadd.xlane.f32.xlu0 %v2065_v21  ;;  %v2087_v46 = vsel %vm1888_vm3, %v1959_v37, 0.0  ;;  %v1985_v37 = vld [vmem:[%s3901_s30 + $0x300] sm:$0xff] }
 0x279   : > { %2248 = vadd.xlane.f32.xlu1 %v2068_v47  ;;  %2246 = vadd.xlane.f32.xlu0 %v2067_v55  ;;  %v1961_v47 = vld [vmem:[%s3901_s30 + $0x240] sm:$0xff] }
 0x27d   : > { %2252 = vadd.xlane.f32.xlu1 %v2070_v51  ;;  %2250 = vadd.xlane.f32.xlu0 %v2069_v19  ;;  %v2089_v51 = vsel %vm1888_vm3, %v1961_v47, 0.0 }
 0x281   : > { %2256 = vadd.xlane.f32.xlu1 %v2072_v40  ;;  %2254 = vadd.xlane.f32.xlu0 %v2071_v62  ;;  %v1963_v40 = vld [vmem:[%s3901_s30 + $0x250] sm:$0xff] }
 0x282   : > { %v2091_v3 = vsel %vm1888_vm3, %v1963_v40, 0.0 }
 0x285   : > { %2260 = vadd.xlane.f32.xlu1 %v2074_v20  ;;  %2258 = vadd.xlane.f32.xlu0 %v2073_v60  ;;  %v2092_v60 = vsel %vm1888_vm3, %v1964_v45, 0.0 }
 0x289   : > { %2264 = vadd.xlane.f32.xlu1 %v2076_v48  ;;  %2262 = vadd.xlane.f32.xlu0 %v2075_v2 }
 0x28d   : > { %2268 = vadd.xlane.f32.xlu1 %v2078_v12  ;;  %2266 = vadd.xlane.f32.xlu0 %v2077_v13 }
 0x291   : > { %2272 = vadd.xlane.f32.xlu1 %v2080_v15  ;;  %2270 = vadd.xlane.f32.xlu0 %v2079_v18  ;;  %v2097_v15 = vsel %vm1888_vm3, %v1969_v17, 0.0  ;;  %v2093_v18 = vsel %vm1888_vm3, %v1965_v5, 0.0 }
 0x295   : > { %2276 = vadd.xlane.f32.xlu1 %v2082_v31  ;;  %2274 = vadd.xlane.f32.xlu0 %v2081_v44  ;;  %v1971_v31 = vld [vmem:[%s3901_s30 + $0x290] sm:$0xff]  ;;  %v1970_v44 = vld [vmem:[%s3901_s30 + $0x288] sm:$0xff] }
 0x296   : > { %v2099_v50 = vsel %vm1888_vm3, %v1971_v31, 0.0  ;;  %v2098_v53 = vsel %vm1888_vm3, %v1970_v44, 0.0 }
 0x299   : > { %2280 = vadd.xlane.f32.xlu1 %v2084_v9  ;;  %2278 = vadd.xlane.f32.xlu0 %v2083_v39 }
 0x29d   : > { %2284 = vadd.xlane.f32.xlu1 %v2086_v52  ;;  %2282 = vadd.xlane.f32.xlu0 %v2085_v56 }
 0x29e   : > { %v2151_v57 = vpop.xlane.xlu1 %2150  ;;  %v2147_v58 = vpop.xlane.xlu0 %2146 }
 0x29f   : > { %v2545_v21 = vrot.slane %v2151_v57, %v4453_v61  ;;  %v2533_v34 = vrot.slane %v2147_v58, %v4446_v22 }
 0x2a1   : > { %2288 = vadd.xlane.f32.xlu1 %v2088_v41  ;;  %2286 = vadd.xlane.f32.xlu0 %v2087_v46 }
 0x2a2   : > { %v2153_v55 = vpop.xlane.xlu1 %2152  ;;  %v2149_v32 = vpop.xlane.xlu0 %2148 }
 0x2a3   : > { %v2552_v19 = vrot.slane %v2153_v55, %v4455_v54  ;;  %v2538_v59 = vrot.slane %v2149_v32, %v4459_v63  ;;  %v1987_v55 = vld [vmem:[%s3901_s30 + $0x310] sm:$0xff]  ;;  %v1972_v32 = vld [vmem:[%s3901_s30 + $0x298] sm:$0xff] }
 0x2a4   : > { %v2115_v45 = vsel %vm1888_vm3, %v1987_v55, 0.0  ;;  %v2100_v40 = vsel %vm1888_vm3, %v1972_v32, 0.0 }
 0x2a5   : > { %v2540_v62 = vsel %vm2539_vm4, %v2538_v59, %v2533_v34  ;;  %2292 = vadd.xlane.f32.xlu1 %v2090_v33  ;;  %2290 = vadd.xlane.f32.xlu0 %v2089_v51  ;;  %v2113_v34 = vsel %vm1888_vm3, %v1985_v37, 0.0 }
 0x2a6   : > { %v2547_v1 = vsel %vm2546_vm5, %v2545_v21, %v2540_v62  ;;  %v2157_v8 = vpop.xlane.xlu1 %2156  ;;  %v2155_v20 = vpop.xlane.xlu0 %2154  ;;  %v2114_v21 = vsel %vm1888_vm3, %v1986_v36, 0.0 }
 0x2a7   : > { %v2566_v4 = vrot.slane %v2157_v8, %v4463_v42  ;;  %v2554_v48 = vsel %vm2553_vm6, %v2552_v19, %v2547_v1  ;;  %v2559_v2 = vrot.slane %v2155_v20, %v4471_v7  ;;  %v2002_v8 = vld [vmem:[%s3901_s30 + $0x388] sm:$0xff]  ;;  %v2001_v20 = vld [vmem:[%s3901_s30 + $0x380] sm:$0xff] }
 0x2a8   : > { %v2129_v17 = vsel %vm1888_vm3, %v2001_v20, 0.0 }
 0x2a9   : > { %v2561_v12 = vsel %vm2560_vm7, %v2559_v2, %v2554_v48  ;;  %2296 = vadd.xlane.f32.xlu1 %v2092_v60  ;;  %2294 = vadd.xlane.f32.xlu0 %v2091_v3  ;;  %v2130_v2 = vsel %vm1888_vm3, %v2002_v8, 0.0 }
 0x2aa   : > { %v2161_v13 = vpop.xlane.xlu1 %2160  ;;  %v2568_v16 = vsel %vm2567_vm8, %v2566_v4, %v2561_v12  ;;  %v2159_v14 = vpop.xlane.xlu0 %2158 }
 0x2ab   : > { %v2580_v25 = vrot.slane %v2161_v13, %v4475_v0  ;;  %v2573_v26 = vrot.slane %v2159_v14, %v4477_v28  ;;  %v1988_v13 = vld [vmem:[%s3901_s30 + $0x318] sm:$0xff] }
 0x2ad   : > { %v2575_v38 = vsel %vm2574_vm9, %v2573_v26, %v2568_v16  ;;  %2306 = vadd.xlane.f32.xlu1 %v2097_v15  ;;  %2298 = vadd.xlane.f32.xlu0 %v2093_v18  ;;  %v1973_v16 = vld [vmem:[%s3901_s30 + $0x2a0] sm:$0xff]  ;;  %v2116_v26 = vsel %vm1888_vm3, %v1988_v13, 0.0 }
 0x2ae   : > { %v2165_v10 = vpop.xlane.xlu1 %2164  ;;  %v2582_v9 = vsel %vm2581_vm10, %v2580_v25, %v2575_v38  ;;  %v2163_v39 = vpop.xlane.xlu0 %2162  ;;  %v2101_v31 = vsel %vm1888_vm3, %v1973_v16, 0.0 }
 0x2af   : > { %v2594_v52 = vrot.slane %v2165_v10, %v4481_v11  ;;  %v2587_v56 = vrot.slane %v2163_v39, %v4489_v27  ;;  %v1974_v10 = vld [vmem:[%s3901_s30 + $0x2a8] sm:$0xff] }
 0x2b1   : > { %v2589_v57 = vsel %vm2588_vm11, %v2587_v56, %v2582_v9  ;;  %2310 = vadd.xlane.f32.xlu1 %v2099_v50  ;;  %2308 = vadd.xlane.f32.xlu0 %v2098_v53  ;;  %v2003_v9 = vld [vmem:[%s3901_s30 + $0x390] sm:$0xff] }
 0x2b2   : > { %v2169_v58 = vpop.xlane.xlu1 %2168  ;;  %v2596_v41 = vsel %vm2595_vm12, %v2594_v52, %v2589_v57  ;;  %v2167_v46 = vpop.xlane.xlu0 %2166  ;;  %v2102_v52 = vsel %vm1888_vm3, %v1974_v10, 0.0  ;;  %v2131_v56 = vsel %vm1888_vm3, %v2003_v9, 0.0  ;;  %v2004_v57 = vld [vmem:[%s3901_s30 + $0x398] sm:$0xff] }
 0x2b3   : > { %v2608_v43 = vrot.slane %v2169_v58, %v4493_v23  ;;  %v2601_v47 = vrot.slane %v2167_v46, %v4495_v6  ;;  %v1989_v58 = vld [vmem:[%s3901_s30 + $0x320] sm:$0xff] }
 0x2b5   : > { %v2603_v33 = vsel %vm2602_vm13, %v2601_v47, %v2596_v41  ;;  %2340 = vadd.xlane.f32.xlu1 %v2114_v21  ;;  %2338 = vadd.xlane.f32.xlu0 %v2113_v34  ;;  %v2117_v47 = vsel %vm1888_vm3, %v1989_v58, 0.0 }
 0x2b6   : > { %v2173_v51 = vpop.xlane.xlu1 %2172  ;;  %v2610_v19 = vsel %vm2609_vm14, %v2608_v43, %v2603_v33  ;;  %v2171_v59 = vpop.xlane.xlu0 %2170  ;;  %v2132_v43 = vsel %vm1888_vm3, %v2004_v57, 0.0  ;;  %v1990_v33 = vld [vmem:[%s3901_s30 + $0x328] sm:$0xff] }
 0x2b7   : > { %v2622_v62 = vrot.slane %v2173_v51, %v4505_v29  ;;  %v2615_v1 = vrot.slane %v2171_v59, %v4499_v30  ;;  %v1975_v51 = vld [vmem:[%s3901_s30 + $0x2b0] sm:$0xff] }
 0x2b9   : > { %v2617_v60 = vsel %vm5158_vm15, %v2615_v1, %v2610_v19  ;;  %2342 = vadd.xlane.f32.xlu1 %v2115_v45  ;;  %2312 = vadd.xlane.f32.xlu0 %v2100_v40  ;;  %v2103_v1 = vsel %vm1888_vm3, %v1975_v51, 0.0 }
 0x2ba   : > { %v2177_v3 = vpop.xlane.xlu1 %2176  ;;  %v2624_v4 = vsel %vm2623_vm0, %v2622_v62, %v2617_v60  ;;  %v2175_v48 = vpop.xlane.xlu0 %2174  ;;  %v2118_v62 = vsel %vm1888_vm3, %v1990_v33, 0.0  ;;  %v1976_v60 = vld [vmem:[%s3901_s30 + $0x2b8] sm:$0xff] }
 0x2bb   : > { %v2636_v5 = vrot.slane %v2177_v3, %v4517_v35  ;;  %v2629_v12 = vrot.slane %v2175_v48, %v4511_v49  ;;  %v2005_v3 = vld [vmem:[%s3901_s30 + $0x3a0] sm:$0xff] }
 0x2bd   : > { %v2631_v14 = vsel %vm2630_vm1, %v2629_v12, %v2624_v4  ;;  %2372 = vadd.xlane.f32.xlu1 %v2130_v2  ;;  %2370 = vadd.xlane.f32.xlu0 %v2129_v17  ;;  %v2133_v12 = vsel %vm1888_vm3, %v2005_v3, 0.0 }
 0x2be   : > { %v4744_v15 = vsel %vm2637_vm2, %v2636_v5, %v2631_v14  ;;  %v2181_v18 = vpop.xlane.xlu1 %2180  ;;  %v2179_v25 = vpop.xlane.xlu0 %2178  ;;  %v2104_v5 = vsel %vm1888_vm3, %v1976_v60, 0.0  ;;  %v2006_v14 = vld [vmem:[%s3901_s30 + $0x3a8] sm:$0xff] }
 0x2bf   : > { %v2646_v44 = vrot.slane %v2181_v18, %v4459_v63  ;;  %v2642_v38 = vrot.slane %v2179_v25, %v4446_v22  ;;  %v1991_v18 = vld [vmem:[%s3901_s30 + $0x330] sm:$0xff] }
 0x2c0   : > { %v2119_v10 = vsel %vm1888_vm3, %v1991_v18, 0.0 }
 0x2c1   : > { %v2647_v39 = vsel %vm2539_vm4, %v2646_v44, %v2642_v38  ;;  %2344 = vadd.xlane.f32.xlu1 %v2116_v26  ;;  %2314 = vadd.xlane.f32.xlu0 %v2101_v31  ;;  %v2134_v38 = vsel %vm1888_vm3, %v2006_v14, 0.0 }
 0x2c2   : > { %v2185_v50 = vpop.xlane.xlu1 %2184  ;;  %v2183_v53 = vpop.xlane.xlu0 %2182 }
 0x2c3   : > { %v2656_v36 = vrot.slane %v2185_v50, %v4455_v54  ;;  %v2651_v37 = vrot.slane %v2183_v53, %v4453_v61  ;;  %v1992_v50 = vld [vmem:[%s3901_s30 + $0x338] sm:$0xff]  ;;  %v1977_v53 = vld [vmem:[%s3901_s30 + $0x2c0] sm:$0xff] }
 0x2c4   : > { %v2120_v57 = vsel %vm1888_vm3, %v1992_v50, 0.0  ;;  %v2105_v58 = vsel %vm1888_vm3, %v1977_v53, 0.0 }
 0x2c5   : > { %v2652_v41 = vsel %vm2546_vm5, %v2651_v37, %v2647_v39  ;;  %2316 = vadd.xlane.f32.xlu1 %v2102_v52  ;;  %2374 = vadd.xlane.f32.xlu0 %v2131_v56 }
 0x2c6   : > { %v2189_v46 = vpop.xlane.xlu1 %2188  ;;  %v2657_v21 = vsel %vm2553_vm6, %v2656_v36, %v2652_v41  ;;  %v2187_v34 = vpop.xlane.xlu0 %2186 }
 0x2c7   : > { %v2666_v55 = vrot.slane %v2189_v46, %v4463_v42  ;;  %v2661_v32 = vrot.slane %v2187_v34, %v4471_v7  ;;  %v2007_v34 = vld [vmem:[%s3901_s30 + $0x3b0] sm:$0xff] }
 0x2c8   : > { %v2135_v51 = vsel %vm1888_vm3, %v2007_v34, 0.0 }
 0x2c9   : > { %v2662_v19 = vsel %vm2560_vm7, %v2661_v32, %v2657_v21  ;;  %2376 = vadd.xlane.f32.xlu1 %v2132_v43  ;;  %2346 = vadd.xlane.f32.xlu0 %v2117_v47  ;;  %v1978_v21 = vld [vmem:[%s3901_s30 + $0x2c8] sm:$0xff] }
 0x2ca   : > { %v2193_v59 = vpop.xlane.xlu1 %2192  ;;  %v2667_v45 = vsel %vm2567_vm8, %v2666_v55, %v2662_v19  ;;  %v2191_v40 = vpop.xlane.xlu0 %2190  ;;  %v2106_v33 = vsel %vm1888_vm3, %v1978_v21, 0.0 }
 0x2cb   : > { %v2676_v8 = vrot.slane %v2193_v59, %v4475_v0  ;;  %v2671_v20 = vrot.slane %v2191_v40, %v4477_v28  ;;  %v1993_v40 = vld [vmem:[%s3901_s30 + $0x340] sm:$0xff] }
 0x2cc   : > { %v2121_v3 = vsel %vm1888_vm3, %v1993_v40, 0.0 }
 0x2cd   : > { %v2672_v4 = vsel %vm2574_vm9, %v2671_v20, %v2667_v45  ;;  %2348 = vadd.xlane.f32.xlu1 %v2118_v62  ;;  %2318 = vadd.xlane.f32.xlu0 %v2103_v1  ;;  %v2008_v45 = vld [vmem:[%s3901_s30 + $0x3b8] sm:$0xff] }
 0x2ce   : > { %v2197_v48 = vpop.xlane.xlu1 %2196  ;;  %v2677_v2 = vsel %vm2581_vm10, %v2676_v8, %v2672_v4  ;;  %v2195_v17 = vpop.xlane.xlu0 %2194  ;;  %v2136_v60 = vsel %vm1888_vm3, %v2008_v45, 0.0 }
 0x2cf   : > { %v2686_v13 = vrot.slane %v2197_v48, %v4481_v11  ;;  %v2681_v16 = vrot.slane %v2195_v17, %v4489_v27  ;;  %v1994_v17 = vld [vmem:[%s3901_s30 + $0x348] sm:$0xff] }
 0x2d0   : > { %v2122_v14 = vsel %vm1888_vm3, %v1994_v17, 0.0 }
 0x2d1   : > { %v2682_v25 = vsel %vm2588_vm11, %v2681_v16, %v2677_v2  ;;  %2320 = vadd.xlane.f32.xlu1 %v2104_v5  ;;  %2378 = vadd.xlane.f32.xlu0 %v2133_v12  ;;  %v1979_v5 = vld [vmem:[%s3901_s30 + $0x2d0] sm:$0xff] }
 0x2d2   : > { %v2201_v26 = vpop.xlane.xlu1 %2200  ;;  %v2687_v31 = vsel %vm2595_vm12, %v2686_v13, %v2682_v25  ;;  %v2199_v44 = vpop.xlane.xlu0 %2198 }
 0x2d3   : > { %v2696_v9 = vrot.slane %v2201_v26, %v4493_v23  ;;  %v2691_v39 = vrot.slane %v2199_v44, %v4495_v6  ;;  %v1980_v26 = vld [vmem:[%s3901_s30 + $0x2d8] sm:$0xff] }
 0x2d5   : > { %v2692_v52 = vsel %vm2602_vm13, %v2691_v39, %v2687_v31  ;;  %2380 = vadd.xlane.f32.xlu1 %v2134_v38  ;;  %2350 = vadd.xlane.f32.xlu0 %v2119_v10  ;;  %v2009_v31 = vld [vmem:[%s3901_s30 + $0x3c0] sm:$0xff]  ;;  %v2108_v39 = vsel %vm1888_vm3, %v1980_v26, 0.0 }
 0x2d6   : > { %v2205_v56 = vpop.xlane.xlu1 %2204  ;;  %v2697_v36 = vsel %vm2609_vm14, %v2696_v9, %v2692_v52  ;;  %v2203_v37 = vpop.xlane.xlu0 %2202  ;;  %v2137_v50 = vsel %vm1888_vm3, %v2009_v31, 0.0 }
 0x2d7   : > { %v2706_v41 = vrot.slane %v2205_v56, %v4505_v29  ;;  %v2701_v46 = vrot.slane %v2203_v37, %v4499_v30  ;;  %v2010_v56 = vld [vmem:[%s3901_s30 + $0x3c8] sm:$0xff] }
 0x2d9   : > { %v2702_v43 = vsel %vm5158_vm15, %v2701_v46, %v2697_v36  ;;  %2352 = vadd.xlane.f32.xlu1 %v2120_v57  ;;  %2322 = vadd.xlane.f32.xlu0 %v2105_v58  ;;  %vm3192_vm15 = vcmask 1041409   ;;  %v1995_v36 = vld [vmem:[%s3901_s30 + $0x350] sm:$0xff]  ;;  %v2138_v46 = vsel %vm1888_vm3, %v2010_v56, 0.0 }
 0x2da   : > { %v2209_v47 = vpop.xlane.xlu1 %2208  ;;  %v2707_v55 = vsel %vm2623_vm0, %v2706_v41, %v2702_v43  ;;  %v2207_v32 = vpop.xlane.xlu0 %2206  ;;  %v2123_v21 = vsel %vm1888_vm3, %v1995_v36, 0.0 }
 0x2db   : > { %v2716_v19 = vrot.slane %v2209_v47, %v4517_v35  ;;  %v2711_v59 = vrot.slane %v2207_v32, %v4511_v49  ;;  %v1981_v47 = vld [vmem:[%s3901_s30 + $0x2e0] sm:$0xff] }
 0x2dd   : > { %v2712_v62 = vsel %vm2630_vm1, %v2711_v59, %v2707_v55  ;;  %2324 = vadd.xlane.f32.xlu1 %v2106_v33  ;;  %2382 = vadd.xlane.f32.xlu0 %v2135_v51  ;;  %v1966_v55 = vld [vmem:[%s3901_s30 + $0x268] sm:$0xff]  ;;  %v2109_v59 = vsel %vm1888_vm3, %v1981_v47, 0.0 }
 0x2de   : > { %v2717_v1 = vsel %vm2637_vm2, %v2716_v19, %v2712_v62  ;;  %v2213_v8 = vpop.xlane.xlu1 %2212  ;;  %v2211_v20 = vpop.xlane.xlu0 %2210  ;;  %v2094_v45 = vsel %vm1888_vm3, %v1966_v55, 0.0 }
 0x2df   : > { %v4830_v4 = vsel %vm3192_vm15, %v2717_v1, %v4744_v15  ;;  %v2725_v48 = vrot.slane %v2213_v8, %v4459_v63  ;;  %v2721_v2 = vrot.slane %v2211_v20, %v4446_v22  ;;  %v2107_v15 = vsel %vm1888_vm3, %v1979_v5, 0.0  ;;  %v2011_v1 = vld [vmem:[%s3901_s30 + $0x3d0] sm:$0xff]  ;;  %v1996_v8 = vld [vmem:[%s3901_s30 + $0x358] sm:$0xff] }
 0x2e0   : > { %v2124_v17 = vsel %vm1888_vm3, %v1996_v8, 0.0  ;;  %vm5162_vm15 = vcmask 851712  }
 0x2e1   : > { %v2726_v12 = vsel %vm2539_vm4, %v2725_v48, %v2721_v2  ;;  %2384 = vadd.xlane.f32.xlu1 %v2136_v60  ;;  %2354 = vadd.xlane.f32.xlu0 %v2121_v3  ;;  %v2139_v2 = vsel %vm1888_vm3, %v2011_v1, 0.0 }
 0x2e2   : > { %v2217_v13 = vpop.xlane.xlu1 %2216  ;;  %v2215_v16 = vpop.xlane.xlu0 %2214 }
 0x2e3   : > { %v2735_v18 = vrot.slane %v2217_v13, %v4455_v54  ;;  %v2730_v25 = vrot.slane %v2215_v16, %v4453_v61  ;;  %v1982_v13 = vld [vmem:[%s3901_s30 + $0x2e8] sm:$0xff]  ;;  %v1967_v16 = vld [vmem:[%s3901_s30 + $0x270] sm:$0xff] }
 0x2e4   : > { %v2110_v26 = vsel %vm1888_vm3, %v1982_v13, 0.0  ;;  %v2095_v31 = vsel %vm1888_vm3, %v1967_v16, 0.0 }
 0x2e5   : > { %v2731_v44 = vsel %vm2546_vm5, %v2730_v25, %v2726_v12  ;;  %2356 = vadd.xlane.f32.xlu1 %v2122_v14  ;;  %2326 = vadd.xlane.f32.xlu0 %v2107_v15 }
 0x2e6   : > { %v2221_v38 = vpop.xlane.xlu1 %2220  ;;  %v2736_v10 = vsel %vm2553_vm6, %v2735_v18, %v2731_v44  ;;  %v2219_v9 = vpop.xlane.xlu0 %2218 }
 0x2e7   : > { %v2745_v53 = vrot.slane %v2221_v38, %v4463_v42  ;;  %v2740_v52 = vrot.slane %v2219_v9, %v4471_v7  ;;  %v1997_v9 = vld [vmem:[%s3901_s30 + $0x360] sm:$0xff] }
 0x2e8   : > { %v2125_v36 = vsel %vm1888_vm3, %v1997_v9, 0.0 }
 0x2e9   : > { %v2741_v37 = vsel %vm2560_vm7, %v2740_v52, %v2736_v10  ;;  %2328 = vadd.xlane.f32.xlu1 %v2108_v39  ;;  %2386 = vadd.xlane.f32.xlu0 %v2137_v50  ;;  %v2012_v10 = vld [vmem:[%s3901_s30 + $0x3d8] sm:$0xff] }
 0x2ea   : > { %v2225_v57 = vpop.xlane.xlu1 %2224  ;;  %v2746_v58 = vsel %vm2567_vm8, %v2745_v53, %v2741_v37  ;;  %v2223_v41 = vpop.xlane.xlu0 %2222  ;;  %v2140_v56 = vsel %vm1888_vm3, %v2012_v10, 0.0 }
 0x2eb   : > { %v2755_v34 = vrot.slane %v2225_v57, %v4475_v0  ;;  %v2750_v43 = vrot.slane %v2223_v41, %v4477_v28  ;;  %v1968_v41 = vld [vmem:[%s3901_s30 + $0x278] sm:$0xff] }
 0x2ec   : > { %v2096_v55 = vsel %vm1888_vm3, %v1968_v41, 0.0 }
 0x2ed   : > { %v2751_v32 = vsel %vm2574_vm9, %v2750_v43, %v2746_v58  ;;  %2388 = vadd.xlane.f32.xlu1 %v2138_v46  ;;  %2358 = vadd.xlane.f32.xlu0 %v2123_v21  ;;  %v1983_v58 = vld [vmem:[%s3901_s30 + $0x2f0] sm:$0xff] }
 0x2ee   : > { %v2229_v33 = vpop.xlane.xlu1 %2228  ;;  %v2756_v51 = vsel %vm2581_vm10, %v2755_v34, %v2751_v32  ;;  %v2227_v19 = vpop.xlane.xlu0 %2226  ;;  %v2111_v47 = vsel %vm1888_vm3, %v1983_v58, 0.0 }
 0x2ef   : > { %v2765_v40 = vrot.slane %v2229_v33, %v4481_v11  ;;  %v2760_v62 = vrot.slane %v2227_v19, %v4489_v27  ;;  %v2013_v19 = vld [vmem:[%s3901_s30 + $0x3e0] sm:$0xff] }
 0x2f0   : > { %v2141_v1 = vsel %vm1888_vm3, %v2013_v19, 0.0 }
 0x2f1   : > { %v2761_v20 = vsel %vm2588_vm11, %v2760_v62, %v2756_v51  ;;  %2330 = vadd.xlane.f32.xlu1 %v2109_v59  ;;  %2300 = vadd.xlane.f32.xlu0 %v2094_v45  ;;  %v1998_v59 = vld [vmem:[%s3901_s30 + $0x368] sm:$0xff] }
 0x2f2   : > { %v2233_v60 = vpop.xlane.xlu1 %2232  ;;  %v2766_v3 = vsel %vm2595_vm12, %v2765_v40, %v2761_v20  ;;  %v2231_v48 = vpop.xlane.xlu0 %2230 }
 0x2f3   : > { %v2775_v5 = vrot.slane %v2233_v60, %v4493_v23  ;;  %v2770_v12 = vrot.slane %v2231_v48, %v4495_v6  ;;  %v1999_v60 = vld [vmem:[%s3901_s30 + $0x370] sm:$0xff] }
 0x2f5   : > { %v2771_v14 = vsel %vm2602_vm13, %v2770_v12, %v2766_v3  ;;  %2390 = vadd.xlane.f32.xlu1 %v2139_v2  ;;  %2360 = vadd.xlane.f32.xlu0 %v2124_v17  ;;  %v1984_v3 = vld [vmem:[%s3901_s30 + $0x2f8] sm:$0xff]  ;;  %v2127_v12 = vsel %vm1888_vm3, %v1999_v60, 0.0 }
 0x2f6   : > { %v2237_v15 = vpop.xlane.xlu1 %2236  ;;  %v2776_v18 = vsel %vm2609_vm14, %v2775_v5, %v2771_v14  ;;  %v2235_v25 = vpop.xlane.xlu0 %2234  ;;  %v2112_v13 = vsel %vm1888_vm3, %v1984_v3, 0.0 }
 0x2f7   : > { %v2785_v44 = vrot.slane %v2237_v15, %v4505_v29  ;;  %v2780_v38 = vrot.slane %v2235_v25, %v4499_v30  ;;  %v2000_v15 = vld [vmem:[%s3901_s30 + $0x378] sm:$0xff] }
 0x2f9   : > { %v2781_v39 = vsel %vm5162_vm15, %v2780_v38, %v2776_v18  ;;  %2332 = vadd.xlane.f32.xlu1 %v2110_v26  ;;  %2302 = vadd.xlane.f32.xlu0 %v2095_v31  ;;  %vm3194_vm15 = vcmask 1042434   ;;  %v2014_v18 = vld [vmem:[%s3901_s30 + $0x3e8] sm:$0xff]  ;;  %v2128_v38 = vsel %vm1888_vm3, %v2000_v15, 0.0 }
 0x2fa   : > { %v2241_v50 = vpop.xlane.xlu1 %2240  ;;  %v2786_v53 = vsel %vm2623_vm0, %v2785_v44, %v2781_v39  ;;  %v2239_v52 = vpop.xlane.xlu0 %2238  ;;  %v2142_v10 = vsel %vm1888_vm3, %v2014_v18, 0.0 }
 0x2fb   : > { %v2795_v37 = vrot.slane %v2241_v50, %v4517_v35  ;;  %v2790_v57 = vrot.slane %v2239_v52, %v4511_v49  ;;  %v2015_v50 = vld [vmem:[%s3901_s30 + $0x3f0] sm:$0xff] }
 0x2fd   : > { %v2791_v46 = vsel %vm2630_vm1, %v2790_v57, %v2786_v53  ;;  %2392 = vadd.xlane.f32.xlu1 %v2140_v56  ;;  %2362 = vadd.xlane.f32.xlu0 %v2125_v36  ;;  %v2016_v53 = vld [vmem:[%s3901_s30 + $0x3f8] sm:$0xff]  ;;  %v2143_v57 = vsel %vm1888_vm3, %v2015_v50, 0.0 }
 0x2fe   : > { %v2796_v21 = vsel %vm2637_vm2, %v2795_v37, %v2791_v46  ;;  %v2245_v34 = vpop.xlane.xlu1 %2244  ;;  %v2243_v43 = vpop.xlane.xlu0 %2242  ;;  %v2144_v58 = vsel %vm1888_vm3, %v2016_v53, 0.0 }
 0x2ff   : > { %v4912_v32 = vsel %vm3194_vm15, %v2796_v21, %v4830_v4  ;;  %v2804_v33 = vrot.slane %v2245_v34, %v4459_v63  ;;  %v2800_v51 = vrot.slane %v2243_v43, %v4446_v22  ;;  %v2126_v4 = vsel %vm1888_vm3, %v1998_v59, 0.0 }
 0x300   : > { %vm5163_vm3 = vcmask 851712   ;;  %vm3196_vm15 = vcmask 1043459  }
 0x301   : > { %v2805_v45 = vsel %vm2539_vm4, %v2804_v33, %v2800_v51  ;;  %2334 = vadd.xlane.f32.xlu1 %v2111_v47  ;;  %2304 = vadd.xlane.f32.xlu0 %v2096_v55 }
 0x302   : > { %v2249_v40 = vpop.xlane.xlu1 %2248  ;;  %v2247_v62 = vpop.xlane.xlu0 %2246 }
 0x303   : > { %v2814_v8 = vrot.slane %v2249_v40, %v4455_v54  ;;  %v2809_v20 = vrot.slane %v2247_v62, %v4453_v61 }
 0x305   : > { %v2810_v48 = vsel %vm2546_vm5, %v2809_v20, %v2805_v45  ;;  %2394 = vadd.xlane.f32.xlu1 %v2141_v1  ;;  %2364 = vadd.xlane.f32.xlu0 %v2126_v4 }
 0x306   : > { %v2253_v2 = vpop.xlane.xlu1 %2252  ;;  %v2815_v17 = vsel %vm2553_vm6, %v2814_v8, %v2810_v48  ;;  %v2251_v5 = vpop.xlane.xlu0 %2250 }
 0x307   : > { %v2824_v16 = vrot.slane %v2253_v2, %v4463_v42  ;;  %v2819_v14 = vrot.slane %v2251_v5, %v4471_v7 }
 0x309   : > { %v2820_v25 = vsel %vm2560_vm7, %v2819_v14, %v2815_v17  ;;  %2366 = vadd.xlane.f32.xlu1 %v2127_v12  ;;  %2336 = vadd.xlane.f32.xlu0 %v2112_v13 }
 0x30a   : > { %v2257_v26 = vpop.xlane.xlu1 %2256  ;;  %v2825_v31 = vsel %vm2567_vm8, %v2824_v16, %v2820_v25  ;;  %v2255_v44 = vpop.xlane.xlu0 %2254 }
 0x30b   : > { %v2834_v9 = vrot.slane %v2257_v26, %v4475_v0  ;;  %v2829_v39 = vrot.slane %v2255_v44, %v4477_v28 }
 0x30d   : > { %v2830_v52 = vsel %vm2574_vm9, %v2829_v39, %v2825_v31  ;;  %2368 = vadd.xlane.f32.xlu1 %v2128_v38  ;;  %2396 = vadd.xlane.f32.xlu0 %v2142_v10 }
 0x30e   : > { %v2261_v56 = vpop.xlane.xlu1 %2260  ;;  %v2835_v36 = vsel %vm2581_vm10, %v2834_v9, %v2830_v52  ;;  %v2259_v37 = vpop.xlane.xlu0 %2258 }
 0x30f   : > { %v2844_v41 = vrot.slane %v2261_v56, %v4481_v11  ;;  %v2839_v46 = vrot.slane %v2259_v37, %v4489_v27 }
 0x311   : > { %v2840_v21 = vsel %vm2588_vm11, %v2839_v46, %v2835_v36  ;;  %2398 = vadd.xlane.f32.xlu0 %v2143_v57  ;;  %2400 = vadd.xlane.f32.xlu1 %v2144_v58 }
 0x312   : > { %v2265_v34 = vpop.xlane.xlu1 %2264  ;;  %v2845_v43 = vsel %vm2595_vm12, %v2844_v41, %v2840_v21  ;;  %v2263_v47 = vpop.xlane.xlu0 %2262 }
 0x313   : > { %v2854_v55 = vrot.slane %v2265_v34, %v4493_v23  ;;  %v2849_v33 = vrot.slane %v2263_v47, %v4495_v6 }
 0x315   : > { %v2850_v51 = vsel %vm2602_vm13, %v2849_v33, %v2845_v43 }
 0x316   : > { %v2269_v24 = vpop.xlane.xlu1 %2268  ;;  %v2855_v19 = vsel %vm2609_vm14, %v2854_v55, %v2850_v51  ;;  %v2267_v59 = vpop.xlane.xlu0 %2266 }
 0x317   : > { %v2864_v45 = vrot.slane %v2269_v24, %v4505_v29  ;;  %v2859_v40 = vrot.slane %v2267_v59, %v4499_v30 }
 0x319   : > { %v2860_v62 = vsel %vm5163_vm3, %v2859_v40, %v2855_v19 }
 0x31a   : > { %v2273_v1 = vpop.xlane.xlu1 %2272  ;;  %v2865_v4 = vsel %vm2623_vm0, %v2864_v45, %v2860_v62  ;;  %v2271_v8 = vpop.xlane.xlu0 %2270 }
 0x31b   : > { %v2874_v20 = vrot.slane %v2273_v1, %v4517_v35  ;;  %v2869_v60 = vrot.slane %v2271_v8, %v4511_v49 }
 0x31d   : > { %v2870_v3 = vsel %vm2630_vm1, %v2869_v60, %v2865_v4 }
 0x31e   : > { %v2875_v48 = vsel %vm2637_vm2, %v2874_v20, %v2870_v3  ;;  %v2277_v2 = vpop.xlane.xlu1 %2276  ;;  %v2275_v17 = vpop.xlane.xlu0 %2274 }
 0x31f   : > { %v2883_v5 = vrot.slane %v2277_v2, %v4459_v63  ;;  %v2879_v12 = vrot.slane %v2275_v17, %v4446_v22  ;;  %v4972_v13 = vsel %vm3196_vm15, %v2875_v48, %v4912_v32 }
 0x321   : > { %v2884_v16 = vsel %vm2539_vm4, %v2883_v5, %v2879_v12 }
 0x322   : > { %v2281_v14 = vpop.xlane.xlu1 %2280  ;;  %v2279_v15 = vpop.xlane.xlu0 %2278 }
 0x323   : > { %v2893_v18 = vrot.slane %v2281_v14, %v4455_v54  ;;  %v2888_v25 = vrot.slane %v2279_v15, %v4453_v61 }
 0x325   : > { %v2889_v26 = vsel %vm2546_vm5, %v2888_v25, %v2884_v16 }
 0x326   : > { %v2285_v31 = vpop.xlane.xlu1 %2284  ;;  %v2894_v44 = vsel %vm2553_vm6, %v2893_v18, %v2889_v26  ;;  %v2283_v38 = vpop.xlane.xlu0 %2282 }
 0x327   : > { %v2903_v10 = vrot.slane %v2285_v31, %v4463_v42  ;;  %v2898_v9 = vrot.slane %v2283_v38, %v4471_v7 }
 0x329   : > { %v2899_v32 = vsel %vm2560_vm7, %v2898_v9, %v2894_v44 }
 0x32a   : > { %v2289_v39 = vpop.xlane.xlu1 %2288  ;;  %v2904_v50 = vsel %vm2567_vm8, %v2903_v10, %v2899_v32  ;;  %v2287_v53 = vpop.xlane.xlu0 %2286 }
 0x32b   : > { %v2913_v52 = vrot.slane %v2289_v39, %v4475_v0  ;;  %v2908_v56 = vrot.slane %v2287_v53, %v4477_v28 }
 0x32d   : > { %v2909_v36 = vsel %vm2574_vm9, %v2908_v56, %v2904_v50 }
 0x32e   : > { %v2293_v37 = vpop.xlane.xlu1 %2292  ;;  %v2914_v57 = vsel %vm2581_vm10, %v2913_v52, %v2909_v36  ;;  %v2291_v58 = vpop.xlane.xlu0 %2290 }
 0x32f   : > { %v2923_v41 = vrot.slane %v2293_v37, %v4481_v11  ;;  %v2918_v46 = vrot.slane %v2291_v58, %v4489_v27 }
 0x331   : > { %v2919_v21 = vsel %vm2588_vm11, %v2918_v46, %v2914_v57 }
 0x332   : > { %v2297_v34 = vpop.xlane.xlu1 %2296  ;;  %v2924_v43 = vsel %vm2595_vm12, %v2923_v41, %v2919_v21  ;;  %v2295_v47 = vpop.xlane.xlu0 %2294 }
 0x333   : > { %v2933_v55 = vrot.slane %v2297_v34, %v4493_v23  ;;  %v2928_v33 = vrot.slane %v2295_v47, %v4495_v6 }
 0x335   : > { %v2929_v51 = vsel %vm2602_vm13, %v2928_v33, %v2924_v43 }
 0x336   : > { %v2307_v24 = vpop.xlane.xlu1 %2306  ;;  %v2934_v19 = vsel %vm2609_vm14, %v2933_v55, %v2929_v51  ;;  %v2299_v59 = vpop.xlane.xlu0 %2298 }
 0x337   : > { %v2958_v45 = vrot.slane %v2307_v24, %v4446_v22  ;;  %v2938_v40 = vrot.slane %v2299_v59, %v4499_v30 }
 0x339   : > { %v4998_v62 = vsel %vm5163_vm3, %v2938_v40, %v2934_v19 }
 0x33a   : > { %v2311_v1 = vpop.xlane.xlu1 %2310  ;;  %v2309_v4 = vpop.xlane.xlu0 %2308 }
 0x33b   : > { %v2967_v8 = vrot.slane %v2311_v1, %v4453_v61  ;;  %v2962_v20 = vrot.slane %v2309_v4, %v4459_v63 }
 0x33d   : > { %v2963_v60 = vsel %vm2539_vm4, %v2962_v20, %v2958_v45 }
 0x33e   : > { %v2341_v3 = vpop.xlane.xlu1 %2340  ;;  %v2339_v48 = vpop.xlane.xlu0 %2338  ;;  %v2968_v2 = vsel %vm2546_vm5, %v2967_v8, %v2963_v60 }
 0x33f   : > { %v3041_v17 = vrot.slane %v2341_v3, %v4459_v63  ;;  %v3037_v5 = vrot.slane %v2339_v48, %v4446_v22 }
 0x341   : > { %v3042_v12 = vsel %vm2539_vm4, %v3041_v17, %v3037_v5 }
 0x342   : > { %v2343_v16 = vpop.xlane.xlu1 %2342  ;;  %v2313_v14 = vpop.xlane.xlu0 %2312 }
 0x343   : > { %v3046_v15 = vrot.slane %v2343_v16, %v4453_v61  ;;  %v2972_v18 = vrot.slane %v2313_v14, %v4455_v54 }
 0x345   : > { %v3047_v25 = vsel %vm2546_vm5, %v3046_v15, %v3042_v12  ;;  %v2973_v26 = vsel %vm2553_vm6, %v2972_v18, %v2968_v2 }
 0x346   : > { %v2373_v31 = vpop.xlane.xlu1 %2372  ;;  %v2371_v44 = vpop.xlane.xlu0 %2370 }
 0x347   : > { %v3120_v38 = vrot.slane %v2373_v31, %v4459_v63  ;;  %v3116_v10 = vrot.slane %v2371_v44, %v4446_v22 }
 0x349   : > { %v3121_v9 = vsel %vm2539_vm4, %v3120_v38, %v3116_v10  ;;  %vm5164_vm4 = vmmov %vm5163_vm3 }
 0x34a   : > { %v2345_v32 = vpop.xlane.xlu1 %2344  ;;  %v2315_v39 = vpop.xlane.xlu0 %2314 }
 0x34b   : > { %v3051_v50 = vrot.slane %v2345_v32, %v4455_v54  ;;  %v2977_v53 = vrot.slane %v2315_v39, %v4471_v7 }
 0x34d   : > { %v3052_v52 = vsel %vm2553_vm6, %v3051_v50, %v3047_v25  ;;  %v2978_v56 = vsel %vm2560_vm7, %v2977_v53, %v2973_v26 }
 0x34e   : > { %v2317_v36 = vpop.xlane.xlu1 %2316  ;;  %v2375_v37 = vpop.xlane.xlu0 %2374 }
 0x34f   : > { %v2982_v57 = vrot.slane %v2317_v36, %v4463_v42  ;;  %v3125_v63 = vrot.slane %v2375_v37, %v4453_v61 }
 0x351   : > { %v2983_v22 = vsel %vm2567_vm8, %v2982_v57, %v2978_v56  ;;  %v3126_v58 = vsel %vm2546_vm5, %v3125_v63, %v3121_v9  ;;  %vm5165_vm5 = vmmov %vm5163_vm3 }
 0x352   : > { %v2377_v41 = vpop.xlane.xlu1 %2376  ;;  %v2347_v46 = vpop.xlane.xlu0 %2346 }
 0x353   : > { %v3130_v21 = vrot.slane %v2377_v41, %v4455_v54  ;;  %v3056_v34 = vrot.slane %v2347_v46, %v4471_v7 }
 0x355   : > { %v3131_v43 = vsel %vm2553_vm6, %v3130_v21, %v3126_v58  ;;  %v3057_v47 = vsel %vm2560_vm7, %v3056_v34, %v3052_v52  ;;  %vm3198_vm6 = vcmask 1044484  }
 0x356   : > { %v2349_v55 = vpop.xlane.xlu1 %2348  ;;  %v2319_v33 = vpop.xlane.xlu0 %2318 }
 0x357   : > { %v3061_v51 = vrot.slane %v2349_v55, %v4463_v42  ;;  %v2987_v61 = vrot.slane %v2319_v33, %v4477_v28 }
 0x359   : > { %v3062_v24 = vsel %vm2567_vm8, %v3061_v51, %v3057_v47  ;;  %v2988_v19 = vsel %vm2574_vm9, %v2987_v61, %v2983_v22 }
 0x35a   : > { %v2321_v59 = vpop.xlane.xlu1 %2320  ;;  %v2379_v45 = vpop.xlane.xlu0 %2378 }
 0x35b   : > { %v2992_v54 = vrot.slane %v2321_v59, %v4475_v0  ;;  %v3135_v40 = vrot.slane %v2379_v45, %v4471_v7 }
 0x35d   : > { %v2993_v1 = vsel %vm2581_vm10, %v2992_v54, %v2988_v19  ;;  %v3136_v4 = vsel %vm2560_vm7, %v3135_v40, %v3131_v43  ;;  %vm5166_vm7 = vmmov %vm5163_vm3 }
 0x35e   : > { %v2381_v8 = vpop.xlane.xlu1 %2380  ;;  %v2351_v20 = vpop.xlane.xlu0 %2350 }
 0x35f   : > { %v3140_v60 = vrot.slane %v2381_v8, %v4463_v42  ;;  %v3066_v3 = vrot.slane %v2351_v20, %v4477_v28 }
 0x361   : > { %v3141_v48 = vsel %vm2567_vm8, %v3140_v60, %v3136_v4  ;;  %v3067_v2 = vsel %vm2574_vm9, %v3066_v3, %v3062_v24  ;;  %vm3200_vm8 = vcmask 1045509  }
 0x362   : > { %v2353_v17 = vpop.xlane.xlu1 %2352  ;;  %v2323_v5 = vpop.xlane.xlu0 %2322 }
 0x363   : > { %v3071_v12 = vrot.slane %v2353_v17, %v4475_v0  ;;  %v2997_v7 = vrot.slane %v2323_v5, %v4489_v27 }
 0x365   : > { %v3072_v16 = vsel %vm2581_vm10, %v3071_v12, %v3067_v2  ;;  %v2998_v14 = vsel %vm2588_vm11, %v2997_v7, %v2993_v1 }
 0x366   : > { %v2325_v15 = vpop.xlane.xlu1 %2324  ;;  %v2383_v18 = vpop.xlane.xlu0 %2382 }
 0x367   : > { %v3002_v42 = vrot.slane %v2325_v15, %v4481_v11  ;;  %v3145_v25 = vrot.slane %v2383_v18, %v4477_v28 }
 0x369   : > { %v3003_v26 = vsel %vm2595_vm12, %v3002_v42, %v2998_v14  ;;  %v3146_v31 = vsel %vm2574_vm9, %v3145_v25, %v3141_v48  ;;  %vm3202_vm9 = vcmask 1046534  }
 0x36a   : > { %v2385_v44 = vpop.xlane.xlu1 %2384  ;;  %v2355_v38 = vpop.xlane.xlu0 %2354 }
 0x36b   : > { %v3150_v10 = vrot.slane %v2385_v44, %v4475_v0  ;;  %v3076_v9 = vrot.slane %v2355_v38, %v4489_v27 }
 0x36d   : > { %v3151_v32 = vsel %vm2581_vm10, %v3150_v10, %v3146_v31  ;;  %v3077_v39 = vsel %vm2588_vm11, %v3076_v9, %v3072_v16  ;;  %vm3204_vm10 = vcmask 1047559  }
 0x36e   : > { %v2357_v50 = vpop.xlane.xlu1 %2356  ;;  %v2327_v53 = vpop.xlane.xlu0 %2326 }
 0x36f   : > { %v3081_v52 = vrot.slane %v2357_v50, %v4481_v11  ;;  %v3007_v28 = vrot.slane %v2327_v53, %v4495_v6 }
 0x371   : > { %v3082_v56 = vsel %vm2595_vm12, %v3081_v52, %v3077_v39  ;;  %v3008_v36 = vsel %vm2602_vm13, %v3007_v28, %v3003_v26 }
 0x372   : > { %v2329_v37 = vpop.xlane.xlu1 %2328  ;;  %v2387_v57 = vpop.xlane.xlu0 %2386 }
 0x373   : > { %v3012_v0 = vrot.slane %v2329_v37, %v4493_v23  ;;  %v3155_v63 = vrot.slane %v2387_v57, %v4489_v27 }
 0x375   : > { %v3013_v22 = vsel %vm2609_vm14, %v3012_v0, %v3008_v36  ;;  %v3156_v58 = vsel %vm2588_vm11, %v3155_v63, %v3151_v32 }
 0x376   : > { %v2389_v41 = vpop.xlane.xlu1 %2388  ;;  %v2359_v46 = vpop.xlane.xlu0 %2358 }
 0x377   : > { %v3160_v21 = vrot.slane %v2389_v41, %v4481_v11  ;;  %v3086_v34 = vrot.slane %v2359_v46, %v4495_v6  ;;  %v2145_v46 = vld [vmem:[#allocation2] sm:$0xff] }
 0x379   : > { %v3161_v43 = vsel %vm2595_vm12, %v3160_v21, %v3156_v58  ;;  %v3087_v47 = vsel %vm2602_vm13, %v3086_v34, %v3082_v56 }
 0x37a   : > { %v2331_v55 = vpop.xlane.xlu1 %2330  ;;  %v2301_v33 = vpop.xlane.xlu0 %2300 }
 0x37b   : > { %v3017_v51 = vrot.slane %v2331_v55, %v4499_v30  ;;  %v2943_v27 = vrot.slane %v2301_v33, %v4505_v29 }
 0x37d   : > { %v3018_v61 = vsel %vm5164_vm4, %v3017_v51, %v3013_v22  ;;  %v2944_v24 = vsel %vm2623_vm0, %v2943_v27, %v4998_v62 }
 0x37e   : > { %v2391_v19 = vpop.xlane.xlu1 %2390  ;;  %v2361_v59 = vpop.xlane.xlu0 %2360 }
 0x37f   : > { %v3165_v11 = vrot.slane %v2391_v19, %v4495_v6  ;;  %v3091_v45 = vrot.slane %v2361_v59, %v4493_v23 }
 0x381   : > { %v3166_v54 = vsel %vm2602_vm13, %v3165_v11, %v3161_v43  ;;  %v3092_v40 = vsel %vm2609_vm14, %v3091_v45, %v3087_v47 }
 0x382   : > { %v2333_v1 = vpop.xlane.xlu1 %2332  ;;  %v2303_v4 = vpop.xlane.xlu0 %2302 }
 0x383   : > { %v3022_v8 = vrot.slane %v2333_v1, %v4505_v29  ;;  %v2948_v20 = vrot.slane %v2303_v4, %v4511_v49 }
 0x385   : > { %v3023_v60 = vsel %vm2623_vm0, %v3022_v8, %v3018_v61  ;;  %v2949_v62 = vsel %vm2630_vm1, %v2948_v20, %v2944_v24 }
 0x386   : > { %v2393_v3 = vpop.xlane.xlu1 %2392  ;;  %v2363_v48 = vpop.xlane.xlu0 %2362 }
 0x387   : > { %v3170_v6 = vrot.slane %v2393_v3, %v4493_v23  ;;  %v3096_v2 = vrot.slane %v2363_v48, %v4499_v30 }
 0x389   : > { %v3171_v17 = vsel %vm2609_vm14, %v3170_v6, %v3166_v54  ;;  %v3097_v5 = vsel %vm5165_vm5, %v3096_v2, %v3092_v40 }
 0x38a   : > { %v2335_v12 = vpop.xlane.xlu1 %2334  ;;  %v2305_v7 = vpop.xlane.xlu0 %2304 }
 0x38b   : > { %v3027_v16 = vrot.slane %v2335_v12, %v4511_v49  ;;  %v2953_v14 = vrot.slane %v2305_v7, %v4517_v35 }
 0x38d   : > { %v3028_v15 = vsel %vm2630_vm1, %v3027_v16, %v3023_v60  ;;  %v2954_v18 = vsel %vm2637_vm2, %v2953_v14, %v2949_v62 }
 0x38e   : > { %v3199_v42 = vsel %vm3198_vm6, %v2954_v18, %v4972_v13  ;;  %v2395_v23 = vpop.xlane.xlu1 %2394  ;;  %v2365_v25 = vpop.xlane.xlu0 %2364 }
 0x38f   : > { %v3175_v26 = vrot.slane %v2395_v23, %v4499_v30  ;;  %v3101_v31 = vrot.slane %v2365_v25, %v4505_v29 }
 0x391   : > { %v3176_v44 = vsel %vm5166_vm7, %v3175_v26, %v3171_v17  ;;  %v3102_v38 = vsel %vm2623_vm0, %v3101_v31, %v3097_v5 }
 0x392   : > { %v2367_v10 = vpop.xlane.xlu1 %2366  ;;  %v2337_v9 = vpop.xlane.xlu0 %2336 }
 0x393   : > { %v3106_v32 = vrot.slane %v2367_v10, %v4511_v49  ;;  %v3032_v39 = vrot.slane %v2337_v9, %v4517_v35 }
 0x395   : > { %v3107_v50 = vsel %vm2630_vm1, %v3106_v32, %v3102_v38  ;;  %v3033_v13 = vsel %vm2637_vm2, %v3032_v39, %v3028_v15 }
 0x396   : > { %v3201_v53 = vsel %vm3200_vm8, %v3033_v13, %v3199_v42  ;;  %v2369_v52 = vpop.xlane.xlu1 %2368  ;;  %v2397_v30 = vpop.xlane.xlu0 %2396 }
 0x397   : > { %v3111_v28 = vrot.slane %v2369_v52, %v4517_v35  ;;  %v3180_v56 = vrot.slane %v2397_v30, %v4505_v29 }
 0x399   : > { %v3112_v36 = vsel %vm2637_vm2, %v3111_v28, %v3107_v50  ;;  %v3181_v37 = vsel %vm2623_vm0, %v3180_v56, %v3176_v44 }
 0x39a   : > { %v3203_v57 = vsel %vm3202_vm9, %v3112_v36, %v3201_v53  ;;  %v2399_v0 = vpop.xlane.xlu0 %2398  ;;  %v2401_v63 = vpop.xlane.xlu1 %2400 }
 0x39b   : > { %v3185_v22 = vrot.slane %v2399_v0, %v4511_v49  ;;  %v3190_v58 = vrot.slane %v2401_v63, %v4517_v35 }
 0x39d   : > { %v3186_v41 = vsel %vm2630_vm1, %v3185_v22, %v3181_v37 }
 0x39e   : > { %v3191_v21 = vsel %vm2637_vm2, %v3190_v58, %v3186_v41 }
 0x39f   : > { %v3205_v34 = vsel %vm3204_vm10, %v3191_v21, %v3203_v57 }
 0x3a0   : > { %v3207_v29 = vadd.f32 %v3205_v34, %v2145_v46 }
 0x3a2   : > { %3208 = vst [vmem:[#allocation2] sm:$0xff] %v3207_v29  ;;  %v3210_v43 = vmul.f32 0.005, %v3207_v29 }
 0x3a4   : > { %3211 = vst [vmem:[%s674_s2] sm:$0xff] %v3210_v43 }
 0x3a5 PF: > { %s3320_s11 = sshll.u32 %s3508_s12, 7  ;;  %s3226_s16 = sshll.u32 %s674_s2, 4  ;;  %s3227_s16 = int_to_ptr.vmem [resolvable:$true] %s3226_s16 }
 0x3a6   : > { %s3224_s5 = scalar_lea.hbm %s5157_s1, %s3320_s11  ;;  %s3213_s17 = scalar_lea.sflag [#allocation5], %s672_s23 }
 0x3a7   : > { %s3412_s21 = scalar_lea.vmem %s3227_s16, 128  ;;  %s3523_s20 = smov [#allocation4]  }
 0x3a8   : > { %p3413_p6 = scmp.ne.s32.totalorder %s3227_s16, %s3412_s21  ;;  %s3416_s22 = sshll.u32 %s3523_s20, 4  ;;  %s3417_s22 = int_to_ptr.vmem [resolvable:$false] %s3416_s22 }
 0x3a9   : > { %s3418_s25 = scalar_lea.vmem %s3417_s22, 256  ;;  %p3419_p10 = scmp.lt.s32.totalorder %s3227_s16, %s3417_s22 }
 0x3aa   : > { %p3414_p8 = pnand %p3413_p6, %p3606_p7  ;;  %p3420_p11 = scmp.lt.s32.totalorder %s3418_s25, %s3412_s21 }
 0x3ac   : > { %p3415_p9 = pneg %p3414_p8  ;;  %p3421_p13 = por %p3420_p11, %p3419_p10 }
 0x3ae   : > { %p3422_p0 = pnand %p3421_p13, %p3415_p9 }
 0x3b0   : > { %3425 = shalt.err (!%p3422_p0)
}
 0x3b1   : > { %s3426_s12 = scalar_lea.hbm %s3224_s5, 128  ;;  %s3430_s30 = scalar_lea.hbm %s5157_s1, 256 }
 0x3b2   : > { %p3427_p1 = scmp.ne.s32.totalorder %s3224_s5, %s3426_s12  ;;  %p3431_p4 = scmp.lt.s32.totalorder %s3224_s5, %s5157_s1 }
 0x3b3   : > { %p3432_p5 = scmp.lt.s32.totalorder %s3430_s30, %s3426_s12 }
 0x3b4   : > { %p3428_p2 = pnand %p3427_p1, %p3606_p7 }
 0x3b5   : > { %p3433_p6 = por %p3432_p5, %p3431_p4 }
 0x3b6   : > { %p3429_p3 = pneg %p3428_p2 }
 0x3b8   : > { %p3434_p8 = pnand %p3433_p6, %p3429_p3 }
 0x3ba   : > { %3437 = shalt.err (!%p3434_p8)
}
 0x3bb   : > { %3324 = dma.vmem_to_hbm [thread:$0]  (%p3606_p7), %s3227_s16, 128, %s3224_s5, %s3213_s17  }
 0x3bc PF: > { %p3330_p9 = scmp.ge.s32.totalorder %s3520_s15, 2  ;;  %s3238_s11 = sand.u32 1, %s3484_s6  }
 0x3bd   : > { %s3239_s3 = scalar_lea.sflag [#allocation5], %s3238_s11 }
 0x3be   : > { %p3327_p10 = pnand %p3330_p9, %p3614_p12 }
 0x3c0   : > { %p3328_p11 = pneg %p3327_p10 }
 0x3c2   : > { %3479 = dma.done.wait (%p3328_p11), %s3239_s3, 128  }
 0x3c3   : > { %3481 = vsyncadd (%p3328_p11), %s3239_s3, 4294967168  ;;  %s14_s15 = sadd.s32 1, %s3520_s15   ;;  %s5167_s6 = smov %s3488_s7 }
 0x3c4   : > { %p11_p13 = scmp.ge.s32.totalorder %s14_s15, 6   ;;  %s5168_s7 = smov %s3492_s8 }
 0x3c5   : > { %s5169_s8 = smov %s3619_s28  ;;  %s5170_s9 = smov %s3500_s10 }
 0x3c6   : > { %s5171_s10 = smov %s3622_s29  ;;  %s5172_s11 = smov %s3512_s13 }
 0x3c7   : > { %s5173_s12 = smov %s3516_s14  ;;  %s5174_s13 = smov %s5177_s18 }
 0x3c8   : > { %s5175_s14 = smov %s5181_s19  ;;  %13 = sbr.rel (!%p11_p13) target bundleno = 6 (0x6), region = 114 }
 0x3cd   :  { %3244 = vsyncpa [#allocation5], 1 }
 0x3ce   :  { %3246 = vsyncpa [#allocation5 + $0x1], 1 }

</bundles_post_ra>
